<compile_context>
chip_gen: v6e
topology: v6e:2x2x1
jax: 0.10.0
libtpu: 0.0.40
codegen_flags: <defaults>
</compile_context>

<pallas_src>
import jax
import jax.numpy as jnp
from jax import lax
from jax.experimental import pallas as pl
from jax.experimental.pallas import tpu as pltpu


def _round_up(x, m):
    return (x + m - 1) // m * m


def _make_conv_bn_act_kernel(kh, kw, stride, activ):
    def kernel(x_ref, w_ref, scale_ref, shift_ref, o_ref):
        _, ho, wo, co = o_ref.shape
        cin = x_ref.shape[-1]
        x = x_ref[0]                                    # [H_in_pad, W_in_pad, C_in_pad]
        acc = jnp.zeros((ho * wo, co), jnp.float32)
        # Direct convolution: one MXU matmul per kernel tap, f32 accumulation.
        for i in range(kh):
            for j in range(kw):
                if stride == 1:
                    patch = x[i:i + ho, j:j + wo, :]
                else:
                    patch = x[i:i + (ho - 1) * stride + 1:stride,
                              j:j + (wo - 1) * stride + 1:stride, :]
                acc = acc + jnp.dot(patch.reshape(ho * wo, cin), w_ref[i, j],
                                    preferred_element_type=jnp.float32)
        # Folded BatchNorm (+ optional conv bias) as a per-channel FMA, then activation.
        y = acc * scale_ref[...] + shift_ref[...]       # broadcast [1, co]
        if activ == "relu":
            y = jnp.maximum(y, 0.0)
        elif activ == "tanh":
            y = jnp.tanh(y)
        elif activ == "sigmoid":
            y = jax.nn.sigmoid(y)
        elif activ == "identity":
            pass
        else:
            raise NotImplementedError(activ)
        o_ref[...] = y.reshape(1, ho, wo, co).astype(o_ref.dtype)

    return kernel


def prepare_params(weight_oihw, conv_bias=None, *, use_bn=True,
                   bn_gamma=None, bn_beta=None, bn_mean=None, bn_var=None,
                   eps=1e-5, compute_dtype=None):
    """One-time parameter re-layout + BN folding (NOT done per forward call).

    weight_oihw: [C_out, C_in, KH, KW] (PyTorch layout).
    Returns (w_hwio_padded [KH,KW,C_in_pad,C_out_pad],
             scale [1,C_out_pad] f32, shift [1,C_out_pad] f32, c_out).
    """
    c_out, c_in, kh, kw = weight_oihw.shape
    c_in_pad = _round_up(c_in, 8)        # sublane-friendly weight second-minor dim
    c_out_pad = _round_up(c_out, 128)    # lane-dense output / weight last dim

    w = jnp.transpose(weight_oihw, (2, 3, 1, 0))          # OIHW -> HWIO
    w = jnp.pad(w, ((0, 0), (0, 0), (0, c_in_pad - c_in), (0, c_out_pad - c_out)))
    if compute_dtype is not None:
        w = w.astype(compute_dtype)

    bias = (jnp.zeros((c_out,), jnp.float32) if conv_bias is None
            else conv_bias.astype(jnp.float32))
    if use_bn:
        gamma = bn_gamma.astype(jnp.float32)
        beta = bn_beta.astype(jnp.float32)
        mean = bn_mean.astype(jnp.float32)
        var = bn_var.astype(jnp.float32)
        scale = gamma / jnp.sqrt(var + eps)
        shift = (bias - mean) * scale + beta
    else:
        scale = jnp.ones((c_out,), jnp.float32)
        shift = bias

    scale = jnp.pad(scale, (0, c_out_pad - c_out)).reshape(1, c_out_pad)
    shift = jnp.pad(shift, (0, c_out_pad - c_out)).reshape(1, c_out_pad)
    return w, scale, shift, c_out


def conv2d_bn_act(x_nchw, w_hwio, scale, shift, c_out, *, stride=1, padding=0,
                  activ="relu", co_tile=128, compute_dtype=None):
    """x_nchw: [N, C_in, H, W] (PyTorch layout). Returns [N, C_out, H_out, W_out]."""
    n, c_in, h, w_sp = x_nchw.shape
    kh, kw, c_in_pad, c_out_pad = w_hwio.shape
    h_out = (h + 2 * padding - kh) // stride + 1
    w_out = (w_sp + 2 * padding - kw) // stride + 1

    # NCHW -> NHWC (channels on lanes), zero-pad: conv padding + channel sublane pad.
    x = jnp.transpose(x_nchw, (0, 2, 3, 1))
    x = jnp.pad(x, ((0, 0), (padding, padding), (padding, padding),
                    (0, c_in_pad - c_in)))
    if compute_dtype is not None:
        x = x.astype(compute_dtype)
    h_in_pad, w_in_pad = x.shape[1], x.shape[2]

    co_tile = min(co_tile, c_out_pad)
    assert c_out_pad % co_tile == 0
    grid = (n, c_out_pad // co_tile)      # (batch, C_out tiles): C_out inner so the
                                          # x tile stays resident across it.

    kernel = _make_conv_bn_act_kernel(kh, kw, stride, activ)

    out = pl.pallas_call(
        kernel,
        out_shape=jax.ShapeDtypeStruct((n, h_out, w_out, c_out_pad), x_nchw.dtype),
        grid_spec=pltpu.PrefetchScalarGridSpec(
            num_scalar_prefetch=0,
            grid=grid,
            in_specs=[
                pl.BlockSpec((1, h_in_pad, w_in_pad, c_in_pad),
                             lambda b, j: (b, 0, 0, 0)),
                pl.BlockSpec((kh, kw, c_in_pad, co_tile),
                             lambda b, j: (0, 0, 0, j)),
                pl.BlockSpec((1, co_tile), lambda b, j: (0, j)),
                pl.BlockSpec((1, co_tile), lambda b, j: (0, j)),
            ],
            out_specs=pl.BlockSpec((1, h_out, w_out, co_tile),
                                   lambda b, j: (b, 0, 0, j)),
        ),
        compiler_params=pltpu.CompilerParams(
            dimension_semantics=("parallel", "parallel"),
        ),
    )(x, w_hwio, scale, shift)

    # Drop channel padding, back to PyTorch NCHW layout.
    out = out[..., :c_out]
    return jnp.transpose(out, (0, 3, 1, 2))


if __name__ == "__main__":
    # Small shapes consistent with the module: N=2, C_in=4, H=W=16, C_out=8, 3x3 conv.
    N, C_IN, H, W = 2, 4, 16, 16
    C_OUT, K, STRIDE, PAD = 8, 3, 1, 1
    EPS = 1e-5

    key = jax.random.PRNGKey(0)
    kx, kw_, kg, kb, km, kv = jax.random.split(key, 6)

    x = jax.random.normal(kx, (N, C_IN, H, W), dtype=jnp.float32)
    fan_in = C_IN * K * K
    bound = 1.0 / jnp.sqrt(jnp.float32(fan_in))
    weight = jax.random.uniform(kw_, (C_OUT, C_IN, K, K),
                                minval=-bound, maxval=bound, dtype=jnp.float32)
    gamma = jax.random.uniform(kg, (C_OUT,), minval=0.5, maxval=1.5, dtype=jnp.float32)
    beta = 0.1 * jax.random.normal(kb, (C_OUT,), dtype=jnp.float32)
    running_mean = 0.1 * jax.random.normal(km, (C_OUT,), dtype=jnp.float32)
    running_var = jax.random.uniform(kv, (C_OUT,), minval=0.5, maxval=1.5,
                                     dtype=jnp.float32)

    # One-time parameter prep (layout transform + BN folding), outside the hot path.
    w_hwio, scale, shift, c_out = prepare_params(
        weight, conv_bias=None, use_bn=True,
        bn_gamma=gamma, bn_beta=beta, bn_mean=running_mean, bn_var=running_var, eps=EPS)

    out = conv2d_bn_act(x, w_hwio, scale, shift, c_out,
                        stride=STRIDE, padding=PAD, activ="relu")
    jax.block_until_ready(out)

    # Reference: plain JAX version of the PyTorch forward (eval-mode BN).
    conv = lax.conv_general_dilated(
        x, weight, window_strides=(STRIDE, STRIDE),
        padding=[(PAD, PAD), (PAD, PAD)],
        dimension_numbers=("NCHW", "OIHW", "NCHW"))
    bn = ((conv - running_mean[None, :, None, None])
          * (gamma[None, :, None, None]
             / jnp.sqrt(running_var[None, :, None, None] + EPS))
          + beta[None, :, None, None])
    ref = jnp.maximum(bn, 0.0)

    assert out.shape == ref.shape == (N, C_OUT, (H + 2 * PAD - K) // STRIDE + 1,
                                      (W + 2 * PAD - K) // STRIDE + 1)
    assert jnp.allclose(out, ref, atol=1e-4, rtol=1e-4), \
        float(jnp.max(jnp.abs(out - ref)))

    print("KERNEL_OK")
</pallas_src>

<mosaic_0001>
module attributes {stable_mosaic.version = 11 : i64} {
  func.func @kernel(%arg0: i32, %arg1: i32, %arg2: memref<1x18x18x8xf32, #tpu.memory_space<vmem>>, %arg3: memref<3x3x8x128xf32, #tpu.memory_space<vmem>>, %arg4: memref<1x128xf32, #tpu.memory_space<vmem>>, %arg5: memref<1x128xf32, #tpu.memory_space<vmem>>, %arg6: memref<1x16x16x128xf32, #tpu.memory_space<vmem>>) attributes {dimension_semantics = [#tpu.dimension_semantics<parallel>, #tpu.dimension_semantics<parallel>], iteration_bounds = array<i64: 2, 1>, scalar_prefetch = 0 : i64, scratch_operands = 0 : i64, tpu.core_type = #tpu.core_type<tc>, window_params = [{transform_indices = @transform_0, window_bounds = array<i64: 1, 18, 18, 8>}, {transform_indices = @transform_1, window_bounds = array<i64: 3, 3, 8, 128>}, {transform_indices = @transform_2, window_bounds = array<i64: 1, 128>}, {transform_indices = @transform_3, window_bounds = array<i64: 1, 128>}, {transform_indices = @transform_4, window_bounds = array<i64: 1, 16, 16, 128>}]} {
    %c0 = arith.constant 0 : index
    %c0_0 = arith.constant 0 : index
    %c0_1 = arith.constant 0 : index
    %c0_2 = arith.constant 0 : index
    %0 = vector.load %arg2[%c0, %c0_0, %c0_1, %c0_2] : memref<1x18x18x8xf32, #tpu.memory_space<vmem>>, vector<1x18x18x8xf32>
    %1 = vector.shape_cast %0 : vector<1x18x18x8xf32> to vector<18x18x8xf32>
    %cst = arith.constant 0.000000e+00 : f32
    %2 = vector.broadcast %cst : f32 to vector<256x128xf32>
    %3 = vector.extract_strided_slice %1 {offsets = [0, 0, 0], sizes = [16, 16, 8], strides = [1, 1, 1]} : vector<18x18x8xf32> to vector<16x16x8xf32>
    %4 = vector.shape_cast %3 : vector<16x16x8xf32> to vector<256x8xf32>
    %c0_3 = arith.constant 0 : index
    %c0_4 = arith.constant 0 : index
    %c0_5 = arith.constant 0 : index
    %c0_6 = arith.constant 0 : index
    %5 = vector.load %arg3[%c0_3, %c0_4, %c0_5, %c0_6] : memref<3x3x8x128xf32, #tpu.memory_space<vmem>>, vector<1x1x8x128xf32>
    %6 = vector.shape_cast %5 : vector<1x1x8x128xf32> to vector<8x128xf32>
    %cst_7 = arith.constant dense<0.000000e+00> : vector<256x128xf32>
    %7 = tpu.matmul %4, %6, %cst_7 {dimension_numbers = #tpu.dot_dimension_numbers<[1], [0], [0], [1], [0, 0, 1, 1], [], []>} : vector<256x8xf32>, vector<8x128xf32>, vector<256x128xf32> -> vector<256x128xf32>
    %8 = arith.addf %2, %7 : vector<256x128xf32>
    %9 = vector.extract_strided_slice %1 {offsets = [0, 1, 0], sizes = [16, 16, 8], strides = [1, 1, 1]} : vector<18x18x8xf32> to vector<16x16x8xf32>
    %10 = vector.shape_cast %9 : vector<16x16x8xf32> to vector<256x8xf32>
    %c0_8 = arith.constant 0 : index
    %c1 = arith.constant 1 : index
    %c0_9 = arith.constant 0 : index
    %c0_10 = arith.constant 0 : index
    %11 = vector.load %arg3[%c0_8, %c1, %c0_9, %c0_10] : memref<3x3x8x128xf32, #tpu.memory_space<vmem>>, vector<1x1x8x128xf32>
    %12 = vector.shape_cast %11 : vector<1x1x8x128xf32> to vector<8x128xf32>
    %cst_11 = arith.constant dense<0.000000e+00> : vector<256x128xf32>
    %13 = tpu.matmul %10, %12, %cst_11 {dimension_numbers = #tpu.dot_dimension_numbers<[1], [0], [0], [1], [0, 0, 1, 1], [], []>} : vector<256x8xf32>, vector<8x128xf32>, vector<256x128xf32> -> vector<256x128xf32>
    %14 = arith.addf %8, %13 : vector<256x128xf32>
    %15 = vector.extract_strided_slice %1 {offsets = [0, 2, 0], sizes = [16, 16, 8], strides = [1, 1, 1]} : vector<18x18x8xf32> to vector<16x16x8xf32>
    %16 = vector.shape_cast %15 : vector<16x16x8xf32> to vector<256x8xf32>
    %c0_12 = arith.constant 0 : index
    %c2 = arith.constant 2 : index
    %c0_13 = arith.constant 0 : index
    %c0_14 = arith.constant 0 : index
    %17 = vector.load %arg3[%c0_12, %c2, %c0_13, %c0_14] : memref<3x3x8x128xf32, #tpu.memory_space<vmem>>, vector<1x1x8x128xf32>
    %18 = vector.shape_cast %17 : vector<1x1x8x128xf32> to vector<8x128xf32>
    %cst_15 = arith.constant dense<0.000000e+00> : vector<256x128xf32>
    %19 = tpu.matmul %16, %18, %cst_15 {dimension_numbers = #tpu.dot_dimension_numbers<[1], [0], [0], [1], [0, 0, 1, 1], [], []>} : vector<256x8xf32>, vector<8x128xf32>, vector<256x128xf32> -> vector<256x128xf32>
    %20 = arith.addf %14, %19 : vector<256x128xf32>
    %21 = vector.extract_strided_slice %1 {offsets = [1, 0, 0], sizes = [16, 16, 8], strides = [1, 1, 1]} : vector<18x18x8xf32> to vector<16x16x8xf32>
    %22 = vector.shape_cast %21 : vector<16x16x8xf32> to vector<256x8xf32>
    %c1_16 = arith.constant 1 : index
    %c0_17 = arith.constant 0 : index
    %c0_18 = arith.constant 0 : index
    %c0_19 = arith.constant 0 : index
    %23 = vector.load %arg3[%c1_16, %c0_17, %c0_18, %c0_19] : memref<3x3x8x128xf32, #tpu.memory_space<vmem>>, vector<1x1x8x128xf32>
    %24 = vector.shape_cast %23 : vector<1x1x8x128xf32> to vector<8x128xf32>
    %cst_20 = arith.constant dense<0.000000e+00> : vector<256x128xf32>
    %25 = tpu.matmul %22, %24, %cst_20 {dimension_numbers = #tpu.dot_dimension_numbers<[1], [0], [0], [1], [0, 0, 1, 1], [], []>} : vector<256x8xf32>, vector<8x128xf32>, vector<256x128xf32> -> vector<256x128xf32>
    %26 = arith.addf %20, %25 : vector<256x128xf32>
    %27 = vector.extract_strided_slice %1 {offsets = [1, 1, 0], sizes = [16, 16, 8], strides = [1, 1, 1]} : vector<18x18x8xf32> to vector<16x16x8xf32>
    %28 = vector.shape_cast %27 : vector<16x16x8xf32> to vector<256x8xf32>
    %c1_21 = arith.constant 1 : index
    %c1_22 = arith.constant 1 : index
    %c0_23 = arith.constant 0 : index
    %c0_24 = arith.constant 0 : index
    %29 = vector.load %arg3[%c1_21, %c1_22, %c0_23, %c0_24] : memref<3x3x8x128xf32, #tpu.memory_space<vmem>>, vector<1x1x8x128xf32>
    %30 = vector.shape_cast %29 : vector<1x1x8x128xf32> to vector<8x128xf32>
    %cst_25 = arith.constant dense<0.000000e+00> : vector<256x128xf32>
    %31 = tpu.matmul %28, %30, %cst_25 {dimension_numbers = #tpu.dot_dimension_numbers<[1], [0], [0], [1], [0, 0, 1, 1], [], []>} : vector<256x8xf32>, vector<8x128xf32>, vector<256x128xf32> -> vector<256x128xf32>
    %32 = arith.addf %26, %31 : vector<256x128xf32>
    %33 = vector.extract_strided_slice %1 {offsets = [1, 2, 0], sizes = [16, 16, 8], strides = [1, 1, 1]} : vector<18x18x8xf32> to vector<16x16x8xf32>
    %34 = vector.shape_cast %33 : vector<16x16x8xf32> to vector<256x8xf32>
    %c1_26 = arith.constant 1 : index
    %c2_27 = arith.constant 2 : index
    %c0_28 = arith.constant 0 : index
    %c0_29 = arith.constant 0 : index
    %35 = vector.load %arg3[%c1_26, %c2_27, %c0_28, %c0_29] : memref<3x3x8x128xf32, #tpu.memory_space<vmem>>, vector<1x1x8x128xf32>
    %36 = vector.shape_cast %35 : vector<1x1x8x128xf32> to vector<8x128xf32>
    %cst_30 = arith.constant dense<0.000000e+00> : vector<256x128xf32>
    %37 = tpu.matmul %34, %36, %cst_30 {dimension_numbers = #tpu.dot_dimension_numbers<[1], [0], [0], [1], [0, 0, 1, 1], [], []>} : vector<256x8xf32>, vector<8x128xf32>, vector<256x128xf32> -> vector<256x128xf32>
    %38 = arith.addf %32, %37 : vector<256x128xf32>
    %39 = vector.extract_strided_slice %1 {offsets = [2, 0, 0], sizes = [16, 16, 8], strides = [1, 1, 1]} : vector<18x18x8xf32> to vector<16x16x8xf32>
    %40 = vector.shape_cast %39 : vector<16x16x8xf32> to vector<256x8xf32>
    %c2_31 = arith.constant 2 : index
    %c0_32 = arith.constant 0 : index
    %c0_33 = arith.constant 0 : index
    %c0_34 = arith.constant 0 : index
    %41 = vector.load %arg3[%c2_31, %c0_32, %c0_33, %c0_34] : memref<3x3x8x128xf32, #tpu.memory_space<vmem>>, vector<1x1x8x128xf32>
    %42 = vector.shape_cast %41 : vector<1x1x8x128xf32> to vector<8x128xf32>
    %cst_35 = arith.constant dense<0.000000e+00> : vector<256x128xf32>
    %43 = tpu.matmul %40, %42, %cst_35 {dimension_numbers = #tpu.dot_dimension_numbers<[1], [0], [0], [1], [0, 0, 1, 1], [], []>} : vector<256x8xf32>, vector<8x128xf32>, vector<256x128xf32> -> vector<256x128xf32>
    %44 = arith.addf %38, %43 : vector<256x128xf32>
    %45 = vector.extract_strided_slice %1 {offsets = [2, 1, 0], sizes = [16, 16, 8], strides = [1, 1, 1]} : vector<18x18x8xf32> to vector<16x16x8xf32>
    %46 = vector.shape_cast %45 : vector<16x16x8xf32> to vector<256x8xf32>
    %c2_36 = arith.constant 2 : index
    %c1_37 = arith.constant 1 : index
    %c0_38 = arith.constant 0 : index
    %c0_39 = arith.constant 0 : index
    %47 = vector.load %arg3[%c2_36, %c1_37, %c0_38, %c0_39] : memref<3x3x8x128xf32, #tpu.memory_space<vmem>>, vector<1x1x8x128xf32>
    %48 = vector.shape_cast %47 : vector<1x1x8x128xf32> to vector<8x128xf32>
    %cst_40 = arith.constant dense<0.000000e+00> : vector<256x128xf32>
    %49 = tpu.matmul %46, %48, %cst_40 {dimension_numbers = #tpu.dot_dimension_numbers<[1], [0], [0], [1], [0, 0, 1, 1], [], []>} : vector<256x8xf32>, vector<8x128xf32>, vector<256x128xf32> -> vector<256x128xf32>
    %50 = arith.addf %44, %49 : vector<256x128xf32>
    %51 = vector.extract_strided_slice %1 {offsets = [2, 2, 0], sizes = [16, 16, 8], strides = [1, 1, 1]} : vector<18x18x8xf32> to vector<16x16x8xf32>
    %52 = vector.shape_cast %51 : vector<16x16x8xf32> to vector<256x8xf32>
    %c2_41 = arith.constant 2 : index
    %c2_42 = arith.constant 2 : index
    %c0_43 = arith.constant 0 : index
    %c0_44 = arith.constant 0 : index
    %53 = vector.load %arg3[%c2_41, %c2_42, %c0_43, %c0_44] : memref<3x3x8x128xf32, #tpu.memory_space<vmem>>, vector<1x1x8x128xf32>
    %54 = vector.shape_cast %53 : vector<1x1x8x128xf32> to vector<8x128xf32>
    %cst_45 = arith.constant dense<0.000000e+00> : vector<256x128xf32>
    %55 = tpu.matmul %52, %54, %cst_45 {dimension_numbers = #tpu.dot_dimension_numbers<[1], [0], [0], [1], [0, 0, 1, 1], [], []>} : vector<256x8xf32>, vector<8x128xf32>, vector<256x128xf32> -> vector<256x128xf32>
    %56 = arith.addf %50, %55 : vector<256x128xf32>
    %c0_46 = arith.constant 0 : index
    %c0_47 = arith.constant 0 : index
    %57 = vector.load %arg4[%c0_46, %c0_47] : memref<1x128xf32, #tpu.memory_space<vmem>>, vector<1x128xf32>
    %58 = vector.broadcast %57 : vector<1x128xf32> to vector<256x128xf32>
    %59 = arith.mulf %56, %58 : vector<256x128xf32>
    %c0_48 = arith.constant 0 : index
    %c0_49 = arith.constant 0 : index
    %60 = vector.load %arg5[%c0_48, %c0_49] : memref<1x128xf32, #tpu.memory_space<vmem>>, vector<1x128xf32>
    %61 = vector.broadcast %60 : vector<1x128xf32> to vector<256x128xf32>
    %62 = arith.addf %59, %61 : vector<256x128xf32>
    %cst_50 = arith.constant 0.000000e+00 : f32
    %63 = vector.broadcast %cst_50 : f32 to vector<256x128xf32>
    %64 = arith.maximumf %62, %63 : vector<256x128xf32>
    %65 = vector.shape_cast %64 : vector<256x128xf32> to vector<1x16x16x128xf32>
    %c0_51 = arith.constant 0 : index
    %c0_52 = arith.constant 0 : index
    %c0_53 = arith.constant 0 : index
    %c0_54 = arith.constant 0 : index
    %66 = vector.load %arg6[%c0_51, %c0_52, %c0_53, %c0_54] : memref<1x16x16x128xf32, #tpu.memory_space<vmem>>, vector<1x16x16x128xf32>
    tpu.vector_store %arg6[%c0_51, %c0_52, %c0_53, %c0_54], %65 {strides = array<i32>} : memref<1x16x16x128xf32, #tpu.memory_space<vmem>>, vector<1x16x16x128xf32>,
    return
  }
  func.func @transform_0(%arg0: i32, %arg1: i32) -> (i32, i32, i32, i32) {
    %c0_i32 = arith.constant 0 : i32
    %c0_i32_0 = arith.constant 0 : i32
    %c0_i32_1 = arith.constant 0 : i32
    %c0_i32_2 = arith.constant 0 : i32
    return %arg0, %c0_i32, %c0_i32_0, %c0_i32_1 : i32, i32, i32, i32
  }
  func.func @transform_1(%arg0: i32, %arg1: i32) -> (i32, i32, i32, i32) {
    %c0_i32 = arith.constant 0 : i32
    %c0_i32_0 = arith.constant 0 : i32
    %c0_i32_1 = arith.constant 0 : i32
    %c0_i32_2 = arith.constant 0 : i32
    return %c0_i32, %c0_i32_0, %c0_i32_1, %arg1 : i32, i32, i32, i32
  }
  func.func @transform_2(%arg0: i32, %arg1: i32) -> (i32, i32) {
    %c0_i32 = arith.constant 0 : i32
    %c0_i32_0 = arith.constant 0 : i32
    return %c0_i32, %arg1 : i32, i32
  }
  func.func @transform_3(%arg0: i32, %arg1: i32) -> (i32, i32) {
    %c0_i32 = arith.constant 0 : i32
    %c0_i32_0 = arith.constant 0 : i32
    return %c0_i32, %arg1 : i32, i32
  }
  func.func @transform_4(%arg0: i32, %arg1: i32) -> (i32, i32, i32, i32) {
    %c0_i32 = arith.constant 0 : i32
    %c0_i32_0 = arith.constant 0 : i32
    %c0_i32_1 = arith.constant 0 : i32
    return %arg0, %c0_i32, %c0_i32_0, %arg1 : i32, i32, i32, i32
  }
}

</mosaic_0001>

<bundles_post_ra>
// kernel: tpu_custom_call.1
= control target key start
LH: loop header
LB: loop body
LE: loop exit
PB: predicated region body
PF: predicated region fallthrough
CT: control target
= control target key end

     0   :  { %9 = vsyncpa [#allocation3], 0  ;;  %s6308_s0 = inlined_call_operand.vmem [shape: f32[2,18,18,8], index: 0, kind: input, shape index: {}]   ;;  %s6309_s1 = inlined_call_operand.vmem [shape: f32[3,3,8,128], index: 1, kind: input, shape index: {}]   ;;  %s6310_s2 = inlined_call_operand.vmem [shape: f32[1,128], index: 2, kind: input, shape index: {}]   ;;  %s6311_s3 = inlined_call_operand.vmem [shape: f32[1,128], index: 3, kind: input, shape index: {}]   ;;  %s6312_s4 = inlined_call_operand.hbm [shape: f32[2,16,16,128], index: 4, kind: output, shape index: {}]  }
   0x1   :  { %11 = vsyncpa [#allocation3 + $0x1], 0  ;;  %s4523_s15 = smov 0   ;;  %s4525_s16 = smov 0  }
   0x2   :  { %s4527_s17 = smov 0   ;;  %s4529_s18 = smov 0  }
   0x3   :  { %s4531_s19 = smov 0   ;;  %s4533_s20 = smov 0  }
   0x4 LB: > { %s3296_s21 = sadd.s32 4294967295, %s4493_s20   ;;  %s3297_s22 = sadd.s32 4294967294, %s4493_s20   ;;  %s4493_s20 = sphi %s4533_s20, %s17_s20   ;;  %s4489_s19 = sphi %s4531_s19, %s6609_s19   ;;  %s4485_s18 = sphi %s4529_s18, %s6608_s18   ;;  %s4481_s17 = sphi %s4527_s17, %s6607_s17   ;;  %s4477_s16 = sphi %s4525_s16, %s6606_s16   ;;  %s4473_s15 = sphi %s4523_s15, %s6605_s15  }
   0x5   : > { %s29_s23 = sadd.s32 1, %s4489_s19  ;;  %s142_s24 = sadd.s32 1, %s4481_s17 }
   0x6   : > { %p31_p0 = scmp.ge.s32.totalorder %s29_s23, 2  ;;  %p152_p1 = scmp.ne.s32.totalorder %s4481_s17, %s4477_s16 }
   0x7   : > { %p153_p2 = scmp.eq.s32.totalorder %s3296_s21, 1  ;;  %p158_p3 = scmp.ne.s32.totalorder %s4477_s16, %s4473_s15 }
   0x8   : > { %s6611_s23 = smov (%p31_p0, %s29_s23), 0  ;;  %p159_p5 = scmp.eq.s32.totalorder %s3297_s22, 1 }
   0x9   : > { %p4563_p4 = por %p153_p2, %p152_p1  ;;  %s137_s26 = ssub.s32 %s4489_s19, %s6611_s23 }
   0xa   : > { %p3303_p6 = scmp.ge.s32.totalorder %s4493_s20, 1  ;;  %p140_p7 = scmp.eq.s32.totalorder %s137_s26, 0 }
   0xb   : > { %p4570_p8 = por %p159_p5, %p158_p3  ;;  %p204_p9 = scmp.lt.s32.totalorder %s4493_s20, 3 }
   0xc   : > { %s4576_s28 = scalar_select %p140_p7, %s4481_s17, %s142_s24  }
   0xd   : > { %p205_p10 = pnand %p3303_p6, %p204_p9 }
   0xf   : > { %208 = sbr.rel (%p205_p10) target bundleno = 536 (0x218), region = 36 }
  0x14   : > { %v3306_v0 = vld [vmem:[%s6309_s1 + $0x8] sm:$0xff]  ;;  %p240_p11 = scmp.lt.s32.totalorder %s4485_s18, 1  ;;  %v309_v1 = vld [vmem:[%s6309_s1] sm:$0xff]  ;;  %v3371_v2 = vld [vmem:[%s6309_s1 + $0x10] sm:$0xff]  ;;  %vm358_vm0 = vcmask 1046528   ;;  %vm441_vm1 = vcmask 64512  }
  0x15   : > { %4357 = vmatprep.subr.mxu1 %v3306_v0  ;;  %3907 = vmatprep.subr.mxu0 %v3306_v0  ;;  %v4635_v21 = vld [vmem:[%s6309_s1 + $0x18] sm:$0xff]  ;;  %v4653_v28 = vld [vmem:[%s6309_s1 + $0x20] sm:$0xff]  ;;  %vm1020_vm2 = vcmask 1045504   ;;  %s3609_s24 = sshll.u32 %s4485_s18, 12  ;;  %s4495_s7 = smov [#allocation2]  }
  0x16   : > { %4358 = vmatpush3.msra.mxu1 %v3306_v0  ;;  %3908 = vmatpush3.msra.mxu0 %v3306_v0  ;;  %s241_s9 = scalar_select %p240_p11, %s4485_s18, 1 }
  0x17   : > { %3957 = vmatprep.subr.mxu1 %v309_v1  ;;  %4007 = vmatprep.subr.mxu0 %v3371_v2  ;;  %s6255_s5 = scalar_lea.hbm %s6312_s4, %s3609_s24  ;;  %s4421_s8 = sshll.u32 %s4495_s7, 4  ;;  %s4422_s8 = int_to_ptr.vmem [resolvable:$false] %s4421_s8 }
  0x18   : > { %s4359_s10 = smul.u32 432, %s241_s9  ;;  %s4423_s9 = scalar_lea.vmem %s4422_s8, 8192 }
  0x1a   : > { %s4592_s13 = scalar_lea.vmem %s6308_s0, %s4359_s10  ;;  %s237_s10 = sand.u32 1, %s4477_s16  }
  0x1b   : > { %v4595_v3 = vld [vmem:[%s4592_s13] sm:$0xff]  ;;  %v4598_v4 = vld [vmem:[%s4592_s13 + $0x8] sm:$0xff]  ;;  %v4610_v10 = vld [vmem:[%s4592_s13 + $0x10] sm:$0x3]  ;;  %s3304_s21 = sshll.u32 %s237_s10, 8  ;;  %s6263_s18 = scalar_lea.sflag [#allocation3], %s237_s10 }
  0x1c   : > { %v4601_v5 = vld [vmem:[%s4592_s13 + $0xc0] sm:$0xff]  ;;  %v359_v6 = vrot.slane %v4595_v3, 1  ;;  %v360_v7 = vrot.slane %v4598_v4, 1  ;;  %v4606_v8 = vld [vmem:[%s4592_s13 + $0xc8] sm:$0xff]  ;;  %v362_v12 = vrot.slane %v4610_v10, 1  ;;  %v4618_v14 = vld [vmem:[%s4592_s13 + $0x18] sm:$0xff] }
  0x1d   : > { %v399_v9 = vrot.slane %v4601_v5, 1  ;;  %v400_v11 = vrot.slane %v4606_v8, 1  ;;  %v4615_v13 = vld [vmem:[%s4592_s13 + $0xd0] sm:$0x3]  ;;  %v4623_v17 = vld [vmem:[%s4592_s13 + $0x20] sm:$0xff]  ;;  %v364_v18 = vrot.slane %v4618_v14, 1 }
  0x1e   : > { %v361_v15 = vsel %vm358_vm0, %v359_v6, %v360_v7  ;;  %v402_v16 = vrot.slane %v4615_v13, 1  ;;  %v4627_v19 = vld [vmem:[%s4592_s13 + $0xd8] sm:$0xff]  ;;  %v4630_v20 = vld [vmem:[%s4592_s13 + $0xe0] sm:$0xff]  ;;  %v363_v23 = vsel %vm358_vm0, %v360_v7, %v362_v12  ;;  %v365_v24 = vrot.slane %v4623_v17, 1  ;;  %v4645_v26 = vld [vmem:[%s4592_s13 + $0x28] sm:$0x3] }
  0x1f   : > { %3909 = vmatprep.mubr.msk.f32.mxu0 %vm441_vm1, %v361_v15  ;;  %v4639_v22 = vsel %vm358_vm0, %v399_v9, %v400_v11  ;;  %v404_v25 = vrot.slane %v4627_v19, 1  ;;  %v4648_v27 = vld [vmem:[%s4592_s13 + $0xe8] sm:$0x3]  ;;  %v405_v30 = vrot.slane %v4630_v20, 1  ;;  %v367_v31 = vrot.slane %v4645_v26, 1  ;;  %v4665_v33 = vld [vmem:[%s4592_s13 + $0x30] sm:$0xff] }
  0x20   : > { %6397 = vst [vmem:[#allocation5_spill] sm:$0xff] %v4639_v22  ;;  %3933 = vmatprep.mubr.msk.f32.mxu1 %vm441_vm1, %v4639_v22  ;;  %3910 = vmatmul.mubr.msk.f32.vlgmr.msra.gmra.mxu0 %vm441_vm1, %v363_v23  ;;  %v4659_v29 = vsel %vm358_vm0, %v400_v11, %v402_v16  ;;  %v407_v32 = vrot.slane %v4648_v27, 1  ;;  %v4668_v34 = vld [vmem:[%s4592_s13 + $0x38] sm:$0xff]  ;;  %v4671_v35 = vld [vmem:[%s4592_s13 + $0xf0] sm:$0xff]  ;;  %v4676_v36 = vsel %vm358_vm0, %v364_v18, %v365_v24  ;;  %v369_v37 = vrot.slane %v4665_v33, 1  ;;  %v4703_v47 = vld [vmem:[%s4592_s13 + $0x48] sm:$0xff] }
  0x21   : > { %6398 = vst [vmem:[#allocation6_spill] sm:$0xff] %v4659_v29  ;;  %3934 = vmatmul.mubr.msk.f32.vlgmr.msra.gmra.mxu1 %vm441_vm1, %v4659_v29  ;;  %4008 = vmatpush3.msra.mxu0 %v3371_v2  ;;  %6399 = vst [vmem:[#allocation7_spill] sm:$0xff] %v4676_v36  ;;  %v370_v38 = vrot.slane %v4668_v34, 1  ;;  %v4681_v39 = vld [vmem:[%s4592_s13 + $0xf8] sm:$0xff]  ;;  %v409_v40 = vrot.slane %v4671_v35, 1  ;;  %v4690_v42 = vsel %vm358_vm0, %v404_v25, %v405_v30  ;;  %v4706_v48 = vld [vmem:[%s4592_s13 + $0x50] sm:$0xff] }
  0x22   : > { %v4685_v41 = vld [vmem:[%s4592_s13 + $0x40] sm:$0x3]  ;;  %3958 = vmatpush3.msra.mxu1 %v309_v1  ;;  %3912 = vmatprep.mubr.msk.f32.mxu0 %vm441_vm1, %v4676_v36  ;;  %6400 = vst [vmem:[#allocation8_spill] sm:$0xff] %v4690_v42  ;;  %v4693_v43 = vsel %vm358_vm0, %v365_v24, %v367_v31  ;;  %v4696_v44 = vsel %vm358_vm0, %v405_v30, %v407_v32  ;;  %v410_v45 = vrot.slane %v4681_v39, 1  ;;  %v374_v52 = vrot.slane %v4703_v47, 1  ;;  %v4717_v53 = vld [vmem:[%s4592_s13 + $0x108] sm:$0xff] }
  0x23   : > { %6401 = vst [vmem:[#allocation9_spill] sm:$0xff] %v4693_v43  ;;  %6402 = vst [vmem:[#allocation10_spill] sm:$0xff] %v4696_v44  ;;  %v4700_v46 = vld [vmem:[%s4592_s13 + $0x100] sm:$0x3]  ;;  %3936 = vmatprep.mubr.msk.f32.mxu1 %vm441_vm1, %v4690_v42  ;;  %v4711_v49 = vsel %vm358_vm0, %v369_v37, %v370_v38  ;;  %v372_v50 = vrot.slane %v4685_v41, 1  ;;  %v4720_v54 = vld [vmem:[%s4592_s13 + $0x110] sm:$0xff]  ;;  %4057 = vmatprep.subr.mxu1 %v4635_v21 }
  0x24   : > { %6403 = vst [vmem:[#allocation11_spill] sm:$0xff] %v4711_v49  ;;  %v412_v51 = vrot.slane %v4700_v46, 1  ;;  %v4723_v55 = vld [vmem:[%s4592_s13 + $0x60] sm:$0xff]  ;;  %3913 = vmatmul.mubr.msk.f32.gmra.mxu0 %vm441_vm1, %v4693_v43  ;;  %v4729_v56 = vsel %vm358_vm0, %v409_v40, %v410_v45  ;;  %v375_v57 = vrot.slane %v4706_v48, 1  ;;  %v414_v58 = vrot.slane %v4717_v53, 1  ;;  %v4738_v61 = vld [vmem:[%s4592_s13 + $0x68] sm:$0xff]  ;;  %4107 = vmatprep.subr.mxu0 %v4653_v28 }
  0x25   : > { %6404 = vst [vmem:[#allocation12_spill] sm:$0xff] %v4729_v56  ;;  %v415_v59 = vrot.slane %v4720_v54, 1  ;;  %v4735_v60 = vld [vmem:[%s4592_s13 + $0x58] sm:$0x3]  ;;  %3937 = vmatmul.mubr.msk.f32.gmra.mxu1 %vm441_vm1, %v4696_v44  ;;  %3915 = vmatprep.mubr.msk.f32.mxu0 %vm441_vm1, %v4711_v49  ;;  %v4746_v62 = vsel %vm358_vm0, %v370_v38, %v372_v50  ;;  %v379_v1 = vrot.slane %v4723_v55, 1  ;;  %v4754_v2 = vld [vmem:[%s4592_s13 + $0x120] sm:$0xff] }
  0x26   : > { %6405 = vst [vmem:[#allocation13_spill] sm:$0xff] %v4746_v62  ;;  %v377_v63 = vrot.slane %v4735_v60, 1  ;;  %v4750_v0 = vld [vmem:[%s4592_s13 + $0x118] sm:$0x3]  ;;  %v4757_v6 = vld [vmem:[%s4592_s13 + $0x128] sm:$0xff]  ;;  %3939 = vmatprep.mubr.msk.f32.mxu1 %vm441_vm1, %v4729_v56  ;;  %v4762_v7 = vsel %vm358_vm0, %v410_v45, %v412_v51  ;;  %v4765_v9 = vsel %vm358_vm0, %v374_v52, %v375_v57  ;;  %v380_v12 = vrot.slane %v4738_v61, 1 }
  0x27   : > { %6406 = vst [vmem:[#allocation14_spill] sm:$0xff] %v4762_v7  ;;  %6407 = vst [vmem:[#allocation15_spill] sm:$0xff] %v4765_v9  ;;  %v417_v11 = vrot.slane %v4750_v0, 1  ;;  %v4770_v15 = vld [vmem:[%s4592_s13 + $0x70] sm:$0x3]  ;;  %v4776_v18 = vsel %vm358_vm0, %v414_v58, %v415_v59  ;;  %v419_v23 = vrot.slane %v4754_v2, 1 }
  0x28   : > { %v4773_v16 = vld [vmem:[%s4592_s13 + $0x130] sm:$0x3]  ;;  %6408 = vst [vmem:[#allocation16_spill] sm:$0xff] %v4776_v18  ;;  %v420_v24 = vrot.slane %v4757_v6, 1  ;;  %v4781_v25 = vld [vmem:[%s4592_s13 + $0x78] sm:$0xff]  ;;  %v4784_v30 = vld [vmem:[%s4592_s13 + $0x80] sm:$0xff]  ;;  %3916 = vmatmul.mubr.msk.f32.gmra.mxu0 %vm441_vm1, %v4746_v62  ;;  %v4799_v37 = vsel %vm358_vm0, %v375_v57, %v377_v63  ;;  %v4809_v50 = vsel %vm358_vm0, %v379_v1, %v380_v12 }
  0x29   : > { %v4789_v31 = vld [vmem:[%s4592_s13 + $0x138] sm:$0xff]  ;;  %v4792_v32 = vld [vmem:[%s4592_s13 + $0x140] sm:$0xff]  ;;  %3940 = vmatmul.mubr.msk.f32.gmra.mxu1 %vm441_vm1, %v4762_v7  ;;  %3918 = vmatprep.mubr.msk.f32.mxu0 %vm441_vm1, %v4765_v9  ;;  %6409 = vst [vmem:[#allocation17_spill] sm:$0xff] %v4799_v37  ;;  %v382_v38 = vrot.slane %v4770_v15, 1  ;;  %v422_v40 = vrot.slane %v4773_v16, 1  ;;  %v4806_v45 = vsel %vm358_vm0, %v415_v59, %v417_v11  ;;  %6411 = vst [vmem:[#allocation19_spill] sm:$0xff] %v4809_v50 }
  0x2a   : > { %3942 = vmatprep.mubr.msk.f32.mxu1 %vm441_vm1, %v4776_v18  ;;  %6410 = vst [vmem:[#allocation18_spill] sm:$0xff] %v4806_v45  ;;  %v384_v51 = vrot.slane %v4781_v25, 1  ;;  %v385_v52 = vrot.slane %v4784_v30, 1  ;;  %v4814_v57 = vld [vmem:[%s4592_s13 + $0x88] sm:$0x3]  ;;  %v4820_v63 = vsel %vm358_vm0, %v419_v23, %v420_v24  ;;  %v424_v7 = vrot.slane %v4789_v31, 1 }
  0x2b   : > { %v4817_v58 = vld [vmem:[%s4592_s13 + $0x148] sm:$0x3]  ;;  %6412 = vst [vmem:[#allocation20_spill] sm:$0xff] %v4820_v63  ;;  %v425_v18 = vrot.slane %v4792_v32, 1  ;;  %v4825_v59 = vld [vmem:[%s4592_s13 + $0x90] sm:$0xff]  ;;  %v4828_v1 = vld [vmem:[%s4592_s13 + $0x98] sm:$0xff]  ;;  %v4843_v23 = vsel %vm358_vm0, %v380_v12, %v382_v38  ;;  %v4850_v29 = vsel %vm358_vm0, %v420_v24, %v422_v40 }
  0x2c   : > { %3919 = vmatmul.mubr.msk.f32.gmra.mxu0 %vm441_vm1, %v4799_v37  ;;  %v4833_v11 = vld [vmem:[%s4592_s13 + $0x150] sm:$0xff]  ;;  %v4836_v56 = vld [vmem:[%s4592_s13 + $0x158] sm:$0xff]  ;;  %6414 = vst [vmem:[#allocation22_spill] sm:$0xff] %v4843_v23  ;;  %v387_v44 = vrot.slane %v4814_v57, 1  ;;  %v427_v42 = vrot.slane %v4817_v58, 1  ;;  %6415 = vst [vmem:[#allocation23_spill] sm:$0xff] %v4850_v29 }
  0x2d   : > { %6413 = vst [vmem:[#allocation21_spill] sm:$0xff] %v4836_v56  ;;  %3943 = vmatmul.mubr.msk.f32.gmra.mxu1 %vm441_vm1, %v4806_v45  ;;  %3921 = vmatprep.mubr.msk.f32.mxu0 %vm441_vm1, %v4809_v50  ;;  %v4853_v45 = vsel %vm358_vm0, %v384_v51, %v385_v52  ;;  %v389_v22 = vrot.slane %v4825_v59, 1  ;;  %v390_v12 = vrot.slane %v4828_v1, 1  ;;  %v4858_v38 = vld [vmem:[%s4592_s13 + $0xa0] sm:$0x3]  ;;  %v4861_v50 = vsel %vm358_vm0, %v424_v7, %v425_v18  ;;  %v4869_v24 = vld [vmem:[%s4592_s13 + $0xa8] sm:$0xff] }
  0x2e   : > { %3945 = vmatprep.mubr.msk.f32.mxu1 %vm441_vm1, %v4820_v63  ;;  %6416 = vst [vmem:[#allocation24_spill] sm:$0xff] %v4853_v45  ;;  %6417 = vst [vmem:[#allocation25_spill] sm:$0xff] %v4861_v50  ;;  %v429_v37 = vrot.slane %v4833_v11, 1  ;;  %v430_v9 = vrot.slane %v4836_v56, 1  ;;  %v4866_v63 = vld [vmem:[%s4592_s13 + $0x160] sm:$0x3]  ;;  %v4887_v7 = vsel %vm358_vm0, %v385_v52, %v387_v44  ;;  %v4890_v49 = vsel %vm358_vm0, %v425_v18, %v427_v42 }
  0x2f   : > { %v4872_v40 = vld [vmem:[%s4592_s13 + $0xb0] sm:$0xff]  ;;  %v4877_v51 = vld [vmem:[%s4592_s13 + $0x168] sm:$0xff]  ;;  %6419 = vst [vmem:[#allocation27_spill] sm:$0xff] %v4887_v7  ;;  %6420 = vst [vmem:[#allocation28_spill] sm:$0xff] %v4890_v49  ;;  %v392_v43 = vrot.slane %v4858_v38, 1  ;;  %v432_v36 = vrot.slane %v4866_v63, 1 }
  0x30   : > { %3922 = vmatmul.mubr.msk.f32.gmra.mxu0 %vm441_vm1, %v4843_v23  ;;  %v4880_v62 = vld [vmem:[%s4592_s13 + $0x170] sm:$0xff]  ;;  %v4896_v23 = vsel %vm358_vm0, %v389_v22, %v390_v12  ;;  %v4902_v56 = vld [vmem:[%s4592_s13 + $0xb8] sm:$0x3]  ;;  %v4905_v44 = vsel %vm358_vm0, %v429_v37, %v430_v9  ;;  %v434_v42 = vrot.slane %v4877_v51, 1  ;;  %s6088_s22 = scalar_lea.vmem [#allocation2], %s3304_s21 }
  0x31   : > { %6418 = vst [vmem:[#allocation26_spill] sm:$0xff] %v4880_v62  ;;  %3946 = vmatmul.mubr.msk.f32.gmra.mxu1 %vm441_vm1, %v4850_v29  ;;  %3924 = vmatprep.mubr.msk.f32.mxu0 %vm441_vm1, %v4853_v45  ;;  %6421 = vst [vmem:[#allocation29_spill] sm:$0xff] %v4896_v23  ;;  %v394_v29 = vrot.slane %v4869_v24, 1  ;;  %v395_v45 = vrot.slane %v4872_v40, 1  ;;  %v435_v18 = vrot.slane %v4880_v62, 1  ;;  %v4919_v22 = vsel %vm358_vm0, %v390_v12, %v392_v43  ;;  %s3185_s26 = sshll.u32 %s6088_s22, 4  ;;  %s6257_s26 = int_to_ptr.vmem [resolvable:$true] %s3185_s26 }
  0x32   : > { %3948 = vmatprep.mubr.msk.f32.mxu1 %vm441_vm1, %v4861_v50  ;;  %6422 = vst [vmem:[#allocation30_spill] sm:$0xff] %v4905_v44  ;;  %v4910_v52 = vld [vmem:[%s4592_s13 + $0x178] sm:$0x3]  ;;  %6423 = vst [vmem:[#allocation31_spill] sm:$0xff] %v4919_v22  ;;  %v397_v37 = vrot.slane %v4902_v56, 1  ;;  %v1021_v50 = vrot.slane %v4595_v3, 2  ;;  %v4926_v62 = vsel %vm358_vm0, %v430_v9, %v432_v36  ;;  %p4424_p1 = scmp.lt.s32.totalorder %s6257_s26, %s4422_s8 }
  0x33   : > { %6424 = vst [vmem:[#allocation32_spill] sm:$0xff] %v4926_v62  ;;  %v4934_v43 = vsel %vm358_vm0, %v434_v42, %v435_v18  ;;  %v1024_v12 = vrot.slane %v4610_v10, 2  ;;  %v1026_v10 = vrot.slane %v4618_v14, 2  ;;  %v1027_v42 = vrot.slane %v4623_v17, 2  ;;  %s4417_s6 = scalar_lea.vmem %s6257_s26, 4096 }
  0x34   : > { %3925 = vmatmul.mubr.msk.f32.gmra.mxu0 %vm441_vm1, %v4887_v7  ;;  %v4929_v7 = vsel %vm358_vm0, %v394_v29, %v395_v45  ;;  %6426 = vst [vmem:[#allocation34_spill] sm:$0xff] %v4934_v43  ;;  %v4944_v29 = vsel %vm358_vm0, %v395_v45, %v397_v37  ;;  %v1029_v37 = vrot.slane %v4645_v26, 2  ;;  %v1034_v26 = vrot.slane %v4685_v41, 2  ;;  %p4418_p12 = scmp.ne.s32.totalorder %s6257_s26, %s4417_s6  ;;  %p4425_p2 = scmp.lt.s32.totalorder %s4423_s9, %s4417_s6 }
  0x35   : > { %3949 = vmatmul.mubr.msk.f32.gmra.mxu1 %vm441_vm1, %v4890_v49  ;;  %3927 = vmatprep.mubr.msk.f32.mxu0 %vm441_vm1, %v4896_v23  ;;  %6425 = vst [vmem:[#allocation33_spill] sm:$0xff] %v4929_v7  ;;  %v437_v49 = vrot.slane %v4910_v52, 1  ;;  %v1022_v23 = vrot.slane %v4598_v4, 2  ;;  %6427 = vst [vmem:[#allocation35_spill] sm:$0xff] %v4944_v29  ;;  %v1039_v41 = vrot.slane %v4735_v60, 2 }
  0x36   : > { %3951 = vmatprep.mubr.msk.f32.mxu1 %vm441_vm1, %v4905_v44  ;;  %p4419_p13 = pnand %p4418_p12, %p4563_p4  ;;  %p4426_p3 = por %p4425_p2, %p4424_p1 }
  0x37   : > { %v4949_v36 = vsel %vm358_vm0, %v435_v18, %v437_v49  ;;  %v1023_v9 = vsel %vm1020_vm2, %v1021_v50, %v1022_v23  ;;  %v1025_v45 = vsel %vm1020_vm2, %v1022_v23, %v1024_v12  ;;  %v1031_v49 = vrot.slane %v4665_v33, 2  ;;  %v4984_v23 = vld [vmem:[%s6309_s1 + $0x30] sm:$0xff] }
  0x38   : > { %3928 = vmatmul.mubr.msk.f32.gmra.mxu0 %vm441_vm1, %v4919_v22  ;;  %6428 = vst [vmem:[#allocation36_spill] sm:$0xff] %v4949_v36  ;;  %v1032_v50 = vrot.slane %v4668_v34, 2  ;;  %v4967_v18 = vsel %vm1020_vm2, %v1026_v10, %v1027_v42  ;;  %p4420_p0 = pneg %p4419_p13 }
  0x39   : > { %3952 = vmatmul.mubr.msk.f32.gmra.mxu1 %vm441_vm1, %v4926_v62  ;;  %3930 = vmatprep.mubr.msk.f32.mxu0 %vm441_vm1, %v4929_v7 }
  0x3a   : > { %3954 = vmatprep.mubr.msk.f32.mxu1 %vm441_vm1, %v4934_v43  ;;  %v4990_v12 = vsel %vm1020_vm2, %v1031_v49, %v1032_v50  ;;  %p4427_p5 = pnand %p4426_p3, %p4420_p0 }
  0x3c   : > { %3931 = vmatmul.mubr.msk.f32.gmra.mxu0 %vm441_vm1, %v4944_v29 }
  0x3d   : > { %3955 = vmatmul.mubr.msk.f32.gmra.mxu1 %vm441_vm1, %v4949_v36  ;;  %4009 = vmatprep.mubr.msk.f32.mxu0 %vm441_vm1, %v1023_v9  ;;  %v4972_v9 = vld [vmem:[%s6309_s1 + $0x28] sm:$0xff] }
  0x3e   : > { %3959 = vmatprep.mubr.msk.f32.mxu1 %vm441_vm1, %v4595_v3  ;;  %v4978_v3 = vsel %vm1020_vm2, %v1027_v42, %v1029_v37  ;;  %v1041_v42 = vrot.slane %v4723_v55, 2  ;;  %v1044_v37 = vrot.slane %v4770_v15, 2 }
  0x40   : > { %4010 = vmatmul.mubr.msk.f32.vlgmr.msra.gmra.mxu0 %vm441_vm1, %v1025_v45  ;;  %v1042_v45 = vrot.slane %v4738_v61, 2 }
  0x41   : > { %3960 = vmatmul.mubr.msk.f32.vlgmr.msra.gmra.mxu1 %vm441_vm1, %v4598_v4  ;;  %4108 = vmatpush3.msra.mxu0 %v4653_v28  ;;  %v1036_v4 = vrot.slane %v4703_v47, 2  ;;  %v1037_v28 = vrot.slane %v4706_v48, 2 }
  0x42   : > { %4058 = vmatpush3.msra.mxu1 %v4635_v21  ;;  %3962 = vmatprep.mubr.msk.f32.mxu1 %vm441_vm1, %v4618_v14  ;;  %v5005_v21 = vsel %vm1020_vm2, %v1032_v50, %v1034_v26  ;;  %v5028_v49 = vsel %vm1020_vm2, %v1041_v42, %v1042_v45  ;;  %v1046_v50 = vrot.slane %v4781_v25, 2  ;;  %v1047_v26 = vrot.slane %v4784_v30, 2 }
  0x43   : > { %4012 = vmatprep.mubr.msk.f32.mxu0 %vm441_vm1, %v4967_v18  ;;  %4157 = vmatprep.subr.mxu1 %v4972_v9  ;;  %v5011_v10 = vsel %vm1020_vm2, %v1036_v4, %v1037_v28  ;;  %v5022_v60 = vsel %vm1020_vm2, %v1037_v28, %v1039_v41  ;;  %v5039_v15 = vsel %vm1020_vm2, %v1042_v45, %v1044_v37  ;;  %v1049_v4 = vrot.slane %v4814_v57, 2 }
  0x44   : > { %4013 = vmatmul.mubr.msk.f32.gmra.mxu0 %vm441_vm1, %v4978_v3  ;;  %4207 = vmatprep.subr.mxu0 %v4984_v23  ;;  %6429 = vst [vmem:[#allocation37_spill] sm:$0xff] %v5039_v15  ;;  %v5045_v28 = vsel %vm1020_vm2, %v1046_v50, %v1047_v26  ;;  %v1051_v41 = vrot.slane %v4825_v59, 2  ;;  %v1052_v42 = vrot.slane %v4828_v1, 2  ;;  %v1054_v45 = vrot.slane %v4858_v38, 2 }
  0x45   : > { %3963 = vmatmul.mubr.msk.f32.gmra.mxu1 %vm441_vm1, %v4623_v17  ;;  %4015 = vmatprep.mubr.msk.f32.mxu0 %vm441_vm1, %v4990_v12  ;;  %v5056_v57 = vsel %vm1020_vm2, %v1047_v26, %v1049_v4  ;;  %v1056_v50 = vrot.slane %v4869_v24, 2  ;;  %v1059_v26 = vrot.slane %v4902_v56, 2 }
  0x46   : > { %3965 = vmatprep.mubr.msk.f32.mxu1 %vm441_vm1, %v4665_v33  ;;  %6430 = vst [vmem:[#allocation38_spill] sm:$0xff] %v5056_v57  ;;  %v5062_v37 = vsel %vm1020_vm2, %v1051_v41, %v1052_v42  ;;  %v5073_v38 = vsel %vm1020_vm2, %v1052_v42, %v1054_v45  ;;  %v1061_v41 = vrot.slane %v4601_v5, 2  ;;  %v1064_v42 = vrot.slane %v4615_v13, 2 }
  0x47   : > { %6431 = vst [vmem:[#allocation39_spill] sm:$0xff] %v5073_v38 }
  0x48   : > { %4016 = vmatmul.mubr.msk.f32.gmra.mxu0 %vm441_vm1, %v5005_v21 }
  0x49   : > { %3966 = vmatmul.mubr.msk.f32.gmra.mxu1 %vm441_vm1, %v4668_v34  ;;  %4018 = vmatprep.mubr.msk.f32.mxu0 %vm441_vm1, %v5011_v10 }
  0x4a   : > { %3968 = vmatprep.mubr.msk.f32.mxu1 %vm441_vm1, %v4703_v47 }
  0x4c   : > { %4019 = vmatmul.mubr.msk.f32.gmra.mxu0 %vm441_vm1, %v5022_v60 }
  0x4d   : > { %3969 = vmatmul.mubr.msk.f32.gmra.mxu1 %vm441_vm1, %v4706_v48  ;;  %4021 = vmatprep.mubr.msk.f32.mxu0 %vm441_vm1, %v5028_v49 }
  0x4e   : > { %3971 = vmatprep.mubr.msk.f32.mxu1 %vm441_vm1, %v4723_v55 }
  0x50   : > { %4022 = vmatmul.mubr.msk.f32.gmra.mxu0 %vm441_vm1, %v5039_v15  ;;  %v1057_v15 = vrot.slane %v4872_v40, 2 }
  0x51   : > { %3972 = vmatmul.mubr.msk.f32.gmra.mxu1 %vm441_vm1, %v4738_v61  ;;  %4024 = vmatprep.mubr.msk.f32.mxu0 %vm441_vm1, %v5045_v28 }
  0x52   : > { %3974 = vmatprep.mubr.msk.f32.mxu1 %vm441_vm1, %v4781_v25  ;;  %v5079_v4 = vsel %vm1020_vm2, %v1056_v50, %v1057_v15  ;;  %v5090_v56 = vsel %vm1020_vm2, %v1057_v15, %v1059_v26  ;;  %v1066_v50 = vrot.slane %v4627_v19, 2  ;;  %v1069_v15 = vrot.slane %v4648_v27, 2 }
  0x53   : > { %6432 = vst [vmem:[#allocation40_spill] sm:$0xff] %v5090_v56 }
  0x54   : > { %4025 = vmatmul.mubr.msk.f32.gmra.mxu0 %vm441_vm1, %v5056_v57  ;;  %v1062_v57 = vrot.slane %v4606_v8, 2 }
  0x55   : > { %3975 = vmatmul.mubr.msk.f32.gmra.mxu1 %vm441_vm1, %v4784_v30  ;;  %4027 = vmatprep.mubr.msk.f32.mxu0 %vm441_vm1, %v5062_v37 }
  0x56   : > { %3977 = vmatprep.mubr.msk.f32.mxu1 %vm441_vm1, %v4825_v59  ;;  %v5096_v45 = vsel %vm1020_vm2, %v1061_v41, %v1062_v57  ;;  %v5107_v13 = vsel %vm1020_vm2, %v1062_v57, %v1064_v42  ;;  %v1071_v41 = vrot.slane %v4671_v35, 2  ;;  %v1074_v57 = vrot.slane %v4700_v46, 2 }
  0x57   : > { %6433 = vst [vmem:[#allocation41_spill] sm:$0xff] %v5107_v13 }
  0x58   : > { %4028 = vmatmul.mubr.msk.f32.gmra.mxu0 %vm441_vm1, %v5073_v38  ;;  %v1067_v38 = vrot.slane %v4630_v20, 2 }
  0x59   : > { %3978 = vmatmul.mubr.msk.f32.gmra.mxu1 %vm441_vm1, %v4828_v1  ;;  %4030 = vmatprep.mubr.msk.f32.mxu0 %vm441_vm1, %v5079_v4 }
  0x5a   : > { %3980 = vmatprep.mubr.msk.f32.mxu1 %vm441_vm1, %v4869_v24  ;;  %v5113_v26 = vsel %vm1020_vm2, %v1066_v50, %v1067_v38  ;;  %v5124_v27 = vsel %vm1020_vm2, %v1067_v38, %v1069_v15  ;;  %v1076_v50 = vrot.slane %v4717_v53, 2  ;;  %v1079_v38 = vrot.slane %v4750_v0, 2 }
  0x5b   : > { %6434 = vst [vmem:[#allocation42_spill] sm:$0xff] %v5124_v27 }
  0x5c   : > { %4031 = vmatmul.mubr.msk.f32.gmra.mxu0 %vm441_vm1, %v5090_v56  ;;  %v1072_v56 = vrot.slane %v4681_v39, 2 }
  0x5d   : > { %3981 = vmatmul.mubr.msk.f32.gmra.mxu1 %vm441_vm1, %v4872_v40  ;;  %4033 = vmatprep.mubr.msk.f32.mxu0 %vm441_vm1, %v5096_v45 }
  0x5e   : > { %3983 = vmatprep.mubr.msk.f32.mxu1 %vm441_vm1, %v4601_v5  ;;  %v5130_v42 = vsel %vm1020_vm2, %v1071_v41, %v1072_v56  ;;  %v5141_v46 = vsel %vm1020_vm2, %v1072_v56, %v1074_v57  ;;  %v1081_v41 = vrot.slane %v4754_v2, 2  ;;  %v1084_v56 = vrot.slane %v4773_v16, 2 }
  0x5f   : > { %6435 = vst [vmem:[#allocation43_spill] sm:$0xff] %v5141_v46 }
  0x60   : > { %4034 = vmatmul.mubr.msk.f32.gmra.mxu0 %vm441_vm1, %v5107_v13  ;;  %v1077_v13 = vrot.slane %v4720_v54, 2 }
  0x61   : > { %3984 = vmatmul.mubr.msk.f32.gmra.mxu1 %vm441_vm1, %v4606_v8  ;;  %4036 = vmatprep.mubr.msk.f32.mxu0 %vm441_vm1, %v5113_v26 }
  0x62   : > { %3986 = vmatprep.mubr.msk.f32.mxu1 %vm441_vm1, %v4627_v19  ;;  %v5147_v15 = vsel %vm1020_vm2, %v1076_v50, %v1077_v13  ;;  %v5158_v0 = vsel %vm1020_vm2, %v1077_v13, %v1079_v38  ;;  %v1086_v50 = vrot.slane %v4789_v31, 2  ;;  %v1089_v13 = vrot.slane %v4817_v58, 2 }
  0x63   : > { %6436 = vst [vmem:[#allocation44_spill] sm:$0xff] %v5147_v15  ;;  %6437 = vst [vmem:[#allocation45_spill] sm:$0xff] %v5158_v0 }
  0x64   : > { %4037 = vmatmul.mubr.msk.f32.gmra.mxu0 %vm441_vm1, %v5124_v27  ;;  %v1082_v27 = vrot.slane %v4757_v6, 2 }
  0x65   : > { %3987 = vmatmul.mubr.msk.f32.gmra.mxu1 %vm441_vm1, %v4630_v20  ;;  %4039 = vmatprep.mubr.msk.f32.mxu0 %vm441_vm1, %v5130_v42 }
  0x66   : > { %3989 = vmatprep.mubr.msk.f32.mxu1 %vm441_vm1, %v4671_v35  ;;  %v5164_v57 = vsel %vm1020_vm2, %v1081_v41, %v1082_v27  ;;  %v5175_v16 = vsel %vm1020_vm2, %v1082_v27, %v1084_v56  ;;  %v1091_v41 = vrot.slane %v4833_v11, 2  ;;  %v1094_v27 = vrot.slane %v4866_v63, 2 }
  0x67   : > { %6438 = vst [vmem:[#allocation46_spill] sm:$0xff] %v5164_v57  ;;  %6439 = vst [vmem:[#allocation47_spill] sm:$0xff] %v5175_v16 }
  0x68   : > { %4040 = vmatmul.mubr.msk.f32.gmra.mxu0 %vm441_vm1, %v5141_v46  ;;  %v1087_v46 = vrot.slane %v4792_v32, 2 }
  0x69   : > { %3990 = vmatmul.mubr.msk.f32.gmra.mxu1 %vm441_vm1, %v4681_v39  ;;  %4042 = vmatprep.mubr.msk.f32.mxu0 %vm441_vm1, %v5147_v15 }
  0x6a   : > { %3992 = vmatprep.mubr.msk.f32.mxu1 %vm441_vm1, %v4717_v53  ;;  %v5181_v38 = vsel %vm1020_vm2, %v1086_v50, %v1087_v46  ;;  %v5192_v58 = vsel %vm1020_vm2, %v1087_v46, %v1089_v13  ;;  %v1096_v50 = vrot.slane %v4877_v51, 2  ;;  %v1099_v46 = vrot.slane %v4910_v52, 2  ;;  %v6443_v52 = vld [vmem:[#allocation7_spill] sm:$0xff] }
  0x6c   : > { %4043 = vmatmul.mubr.msk.f32.gmra.mxu0 %vm441_vm1, %v5158_v0  ;;  %v6440_v0 = vld [vmem:[#allocation21_spill] sm:$0xff] }
  0x6d   : > { %3993 = vmatmul.mubr.msk.f32.gmra.mxu1 %vm441_vm1, %v4720_v54  ;;  %4045 = vmatprep.mubr.msk.f32.mxu0 %vm441_vm1, %v5164_v57  ;;  %v1092_v15 = vrot.slane %v6440_v0, 2 }
  0x6e   : > { %3995 = vmatprep.mubr.msk.f32.mxu1 %vm441_vm1, %v4754_v2 }
  0x6f   : > { %v5198_v56 = vsel %vm1020_vm2, %v1091_v41, %v1092_v15  ;;  %v5209_v63 = vsel %vm1020_vm2, %v1092_v15, %v1094_v27  ;;  %v6444_v41 = vld [vmem:[#allocation9_spill] sm:$0xff] }
  0x70   : > { %4046 = vmatmul.mubr.msk.f32.gmra.mxu0 %vm441_vm1, %v5175_v16  ;;  %v6441_v16 = vld [vmem:[#allocation26_spill] sm:$0xff]  ;;  %v5249_v27 = vld [vmem:[%s6309_s1 + $0x40] sm:$0xff] }
  0x71   : > { %3996 = vmatmul.mubr.msk.f32.gmra.mxu1 %vm441_vm1, %v4757_v6  ;;  %4048 = vmatprep.mubr.msk.f32.mxu0 %vm441_vm1, %v5181_v38  ;;  %v1097_v57 = vrot.slane %v6441_v16, 2 }
  0x72   : > { %3998 = vmatprep.mubr.msk.f32.mxu1 %vm441_vm1, %v4789_v31 }
  0x73   : > { %v5215_v13 = vsel %vm1020_vm2, %v1096_v50, %v1097_v57  ;;  %v5224_v15 = vsel %vm1020_vm2, %v1097_v57, %v1099_v46  ;;  %v5241_v57 = vld [vmem:[%s6309_s1 + $0x38] sm:$0xff]  ;;  %v6446_v50 = vld [vmem:[#allocation13_spill] sm:$0xff]  ;;  %v6450_v46 = vld [vmem:[#allocation22_spill] sm:$0xff] }
  0x74   : > { %4049 = vmatmul.mubr.msk.f32.gmra.mxu0 %vm441_vm1, %v5192_v58  ;;  %6442 = vst [vmem:[#allocation21_spill] sm:$0xff] %v5224_v15 }
  0x75   : > { %3999 = vmatmul.mubr.msk.f32.gmra.mxu1 %vm441_vm1, %v4792_v32  ;;  %4051 = vmatprep.mubr.msk.f32.mxu0 %vm441_vm1, %v5198_v56 }
  0x76   : > { %4001 = vmatprep.mubr.msk.f32.mxu1 %vm441_vm1, %v4833_v11 }
  0x78   : > { %4052 = vmatmul.mubr.msk.f32.gmra.mxu0 %vm441_vm1, %v5209_v63 }
  0x79   : > { %4002 = vmatmul.mubr.msk.f32.gmra.mxu1 %vm441_vm1, %v6440_v0  ;;  %4054 = vmatprep.mubr.msk.f32.mxu0 %vm441_vm1, %v5215_v13 }
  0x7a   : > { %4004 = vmatprep.mubr.msk.f32.mxu1 %vm441_vm1, %v4877_v51 }
  0x7c   : > { %4055 = vmatmul.mubr.msk.f32.gmra.mxu0 %vm441_vm1, %v5224_v15 }
  0x7d   : > { %4005 = vmatmul.mubr.msk.f32.gmra.mxu1 %vm441_vm1, %v6441_v16  ;;  %4109 = vmatprep.mubr.msk.f32.mxu0 %vm441_vm1, %v6443_v52  ;;  %v6451_v52 = vld [vmem:[#allocation24_spill] sm:$0xff] }
  0x7e   : > { %4059 = vmatprep.mubr.msk.f32.mxu1 %vm441_vm1, %v4618_v14  ;;  %v6445_v14 = vld [vmem:[#allocation11_spill] sm:$0xff] }
  0x80   : > { %4110 = vmatmul.mubr.msk.f32.vlgmr.msra.gmra.mxu0 %vm441_vm1, %v6444_v41  ;;  %v6452_v41 = vld [vmem:[#allocation27_spill] sm:$0xff] }
  0x81   : > { %4060 = vmatmul.mubr.msk.f32.vlgmr.msra.gmra.mxu1 %vm441_vm1, %v4623_v17  ;;  %4208 = vmatpush3.msra.mxu0 %v4984_v23  ;;  %v6447_v17 = vld [vmem:[#allocation15_spill] sm:$0xff] }
  0x82   : > { %4158 = vmatpush3.msra.mxu1 %v4972_v9  ;;  %4062 = vmatprep.mubr.msk.f32.mxu1 %vm441_vm1, %v4665_v33  ;;  %v6448_v9 = vld [vmem:[#allocation17_spill] sm:$0xff]  ;;  %v6449_v23 = vld [vmem:[#allocation19_spill] sm:$0xff] }
  0x83   : > { %4112 = vmatprep.mubr.msk.f32.mxu0 %vm441_vm1, %v6445_v14  ;;  %4257 = vmatprep.subr.mxu1 %v5241_v57 }
  0x84   : > { %4113 = vmatmul.mubr.msk.f32.gmra.mxu0 %vm441_vm1, %v6446_v50  ;;  %4307 = vmatprep.subr.mxu0 %v5249_v27 }
  0x85   : > { %4063 = vmatmul.mubr.msk.f32.gmra.mxu1 %vm441_vm1, %v4668_v34  ;;  %4115 = vmatprep.mubr.msk.f32.mxu0 %vm441_vm1, %v6447_v17 }
  0x86   : > { %4065 = vmatprep.mubr.msk.f32.mxu1 %vm441_vm1, %v4703_v47 }
  0x88   : > { %4116 = vmatmul.mubr.msk.f32.gmra.mxu0 %vm441_vm1, %v6448_v9 }
  0x89   : > { %4066 = vmatmul.mubr.msk.f32.gmra.mxu1 %vm441_vm1, %v4706_v48  ;;  %4118 = vmatprep.mubr.msk.f32.mxu0 %vm441_vm1, %v6449_v23  ;;  %v6453_v23 = vld [vmem:[#allocation29_spill] sm:$0xff] }
  0x8a   : > { %4068 = vmatprep.mubr.msk.f32.mxu1 %vm441_vm1, %v4723_v55 }
  0x8c   : > { %4119 = vmatmul.mubr.msk.f32.gmra.mxu0 %vm441_vm1, %v6450_v46 }
  0x8d   : > { %4069 = vmatmul.mubr.msk.f32.gmra.mxu1 %vm441_vm1, %v4738_v61  ;;  %4121 = vmatprep.mubr.msk.f32.mxu0 %vm441_vm1, %v6451_v52  ;;  %v5363_v52 = vld [vmem:[%s4592_s13 + $0x190] sm:$0x3] }
  0x8e   : > { %4071 = vmatprep.mubr.msk.f32.mxu1 %vm441_vm1, %v4781_v25 }
  0x90   : > { %4122 = vmatmul.mubr.msk.f32.gmra.mxu0 %vm441_vm1, %v6452_v41  ;;  %v5350_v41 = vld [vmem:[%s4592_s13 + $0x188] sm:$0xff] }
  0x91   : > { %4072 = vmatmul.mubr.msk.f32.gmra.mxu1 %vm441_vm1, %v4784_v30  ;;  %4124 = vmatprep.mubr.msk.f32.mxu0 %vm441_vm1, %v6453_v23  ;;  %v6454_v23 = vld [vmem:[#allocation5_spill] sm:$0xff] }
  0x92   : > { %4074 = vmatprep.mubr.msk.f32.mxu1 %vm441_vm1, %v4825_v59 }
  0x94   : > { %4125 = vmatmul.mubr.msk.f32.gmra.mxu0 %vm441_vm1, %v4919_v22  ;;  %v6455_v22 = vld [vmem:[#allocation6_spill] sm:$0xff] }
  0x95   : > { %4075 = vmatmul.mubr.msk.f32.gmra.mxu1 %vm441_vm1, %v4828_v1  ;;  %4127 = vmatprep.mubr.msk.f32.mxu0 %vm441_vm1, %v4929_v7  ;;  %v6456_v7 = vld [vmem:[#allocation8_spill] sm:$0xff] }
  0x96   : > { %4077 = vmatprep.mubr.msk.f32.mxu1 %vm441_vm1, %v4869_v24 }
  0x98   : > { %4128 = vmatmul.mubr.msk.f32.gmra.mxu0 %vm441_vm1, %v4944_v29  ;;  %v6457_v29 = vld [vmem:[#allocation10_spill] sm:$0xff] }
  0x99   : > { %4078 = vmatmul.mubr.msk.f32.gmra.mxu1 %vm441_vm1, %v4872_v40  ;;  %4130 = vmatprep.mubr.msk.f32.mxu0 %vm441_vm1, %v6454_v23  ;;  %v6458_v23 = vld [vmem:[#allocation12_spill] sm:$0xff] }
  0x9a   : > { %4080 = vmatprep.mubr.msk.f32.mxu1 %vm441_vm1, %v4601_v5 }
  0x9c   : > { %4131 = vmatmul.mubr.msk.f32.gmra.mxu0 %vm441_vm1, %v6455_v22  ;;  %v6459_v22 = vld [vmem:[#allocation14_spill] sm:$0xff] }
  0x9d   : > { %4081 = vmatmul.mubr.msk.f32.gmra.mxu1 %vm441_vm1, %v4606_v8  ;;  %4133 = vmatprep.mubr.msk.f32.mxu0 %vm441_vm1, %v6456_v7  ;;  %v6460_v7 = vld [vmem:[#allocation16_spill] sm:$0xff] }
  0x9e   : > { %4083 = vmatprep.mubr.msk.f32.mxu1 %vm441_vm1, %v4627_v19 }
  0xa0   : > { %4134 = vmatmul.mubr.msk.f32.gmra.mxu0 %vm441_vm1, %v6457_v29  ;;  %v6461_v29 = vld [vmem:[#allocation18_spill] sm:$0xff] }
  0xa1   : > { %4084 = vmatmul.mubr.msk.f32.gmra.mxu1 %vm441_vm1, %v4630_v20  ;;  %4136 = vmatprep.mubr.msk.f32.mxu0 %vm441_vm1, %v6458_v23  ;;  %v6462_v23 = vld [vmem:[#allocation20_spill] sm:$0xff] }
  0xa2   : > { %4086 = vmatprep.mubr.msk.f32.mxu1 %vm441_vm1, %v4671_v35 }
  0xa4   : > { %4137 = vmatmul.mubr.msk.f32.gmra.mxu0 %vm441_vm1, %v6459_v22  ;;  %v6463_v22 = vld [vmem:[#allocation23_spill] sm:$0xff] }
  0xa5   : > { %4087 = vmatmul.mubr.msk.f32.gmra.mxu1 %vm441_vm1, %v4681_v39  ;;  %4139 = vmatprep.mubr.msk.f32.mxu0 %vm441_vm1, %v6460_v7  ;;  %v6464_v7 = vld [vmem:[#allocation25_spill] sm:$0xff] }
  0xa6   : > { %4089 = vmatprep.mubr.msk.f32.mxu1 %vm441_vm1, %v4717_v53 }
  0xa8   : > { %4140 = vmatmul.mubr.msk.f32.gmra.mxu0 %vm441_vm1, %v6461_v29  ;;  %v5347_v29 = vld [vmem:[%s4592_s13 + $0x180] sm:$0xff] }
  0xa9   : > { %4090 = vmatmul.mubr.msk.f32.gmra.mxu1 %vm441_vm1, %v4720_v54  ;;  %4142 = vmatprep.mubr.msk.f32.mxu0 %vm441_vm1, %v6462_v23  ;;  %v6465_v23 = vld [vmem:[#allocation28_spill] sm:$0xff] }
  0xaa   : > { %4092 = vmatprep.mubr.msk.f32.mxu1 %vm441_vm1, %v4754_v2 }
  0xac   : > { %4143 = vmatmul.mubr.msk.f32.gmra.mxu0 %vm441_vm1, %v6463_v22  ;;  %v1691_v22 = vrot.slane %v5350_v41, 1 }
  0xad   : > { %4093 = vmatmul.mubr.msk.f32.gmra.mxu1 %vm441_vm1, %v4757_v6  ;;  %4145 = vmatprep.mubr.msk.f32.mxu0 %vm441_vm1, %v6464_v7  ;;  %v1690_v7 = vrot.slane %v5347_v29, 1 }
  0xae   : > { %4095 = vmatprep.mubr.msk.f32.mxu1 %vm441_vm1, %v4789_v31 }
  0xb0   : > { %4146 = vmatmul.mubr.msk.f32.gmra.mxu0 %vm441_vm1, %v6465_v23  ;;  %v5375_v23 = vsel %vm358_vm0, %v1690_v7, %v1691_v22 }
  0xb1   : > { %4096 = vmatmul.mubr.msk.f32.gmra.mxu1 %vm441_vm1, %v4792_v32  ;;  %4148 = vmatprep.mubr.msk.f32.mxu0 %vm441_vm1, %v4905_v44  ;;  %v1693_v44 = vrot.slane %v5363_v52, 1  ;;  %6466 = vst [vmem:[#allocation26_spill] sm:$0xff] %v5375_v23 }
  0xb2   : > { %4098 = vmatprep.mubr.msk.f32.mxu1 %vm441_vm1, %v4833_v11 }
  0xb4   : > { %4149 = vmatmul.mubr.msk.f32.gmra.mxu0 %vm441_vm1, %v4926_v62  ;;  %v5384_v62 = vsel %vm358_vm0, %v1691_v22, %v1693_v44  ;;  %v6478_v22 = vld [vmem:[#allocation47_spill] sm:$0xff] }
  0xb5   : > { %4099 = vmatmul.mubr.msk.f32.gmra.mxu1 %vm441_vm1, %v6440_v0  ;;  %4151 = vmatprep.mubr.msk.f32.mxu0 %vm441_vm1, %v4934_v43  ;;  %6467 = vst [vmem:[#allocation7_spill] sm:$0xff] %v5384_v62 }
  0xb6   : > { %4101 = vmatprep.mubr.msk.f32.mxu1 %vm441_vm1, %v4877_v51 }
  0xb8   : > { %4152 = vmatmul.mubr.msk.f32.gmra.mxu0 %vm441_vm1, %v4949_v36  ;;  %v5559_v36 = vld [vmem:[%s4592_s13 + $0x198] sm:$0xff] }
  0xb9   : > { %4102 = vmatmul.mubr.msk.f32.gmra.mxu1 %vm441_vm1, %v6441_v16  ;;  %4154 = vmatprep.mubr.msk.f32.mxu0 %vm441_vm1, %v5375_v23 }
  0xba   : > { %4104 = vmatprep.mubr.msk.f32.mxu1 %vm441_vm1, %v5347_v29 }
  0xbc   : > { %4155 = vmatmul.mubr.msk.f32.gmra.mxu0 %vm441_vm1, %v5384_v62 }
  0xbd   : > { %4105 = vmatmul.mubr.msk.f32.gmra.mxu1 %vm441_vm1, %v5350_v41  ;;  %4209 = vmatprep.mubr.msk.f32.mxu0 %vm441_vm1, %v4665_v33  ;;  %v6468_v33 = vld [vmem:[#allocation37_spill] sm:$0xff] }
  0xbe   : > { %4159 = vmatprep.mubr.msk.f32.mxu1 %vm441_vm1, %v4967_v18 }
  0xc0   : > { %4210 = vmatmul.mubr.msk.f32.vlgmr.msra.gmra.mxu0 %vm441_vm1, %v4668_v34  ;;  %v6469_v34 = vld [vmem:[#allocation38_spill] sm:$0xff] }
  0xc1   : > { %4160 = vmatmul.mubr.msk.f32.vlgmr.msra.gmra.mxu1 %vm441_vm1, %v4978_v3  ;;  %4308 = vmatpush3.msra.mxu0 %v5249_v27 }
  0xc2   : > { %4258 = vmatpush3.msra.mxu1 %v5241_v57  ;;  %4162 = vmatprep.mubr.msk.f32.mxu1 %vm441_vm1, %v4990_v12  ;;  %v1958_v57 = vrot.slane %v5347_v29, 2 }
  0xc3   : > { %4212 = vmatprep.mubr.msk.f32.mxu0 %vm441_vm1, %v4703_v47  ;;  %v6470_v47 = vld [vmem:[#allocation39_spill] sm:$0xff] }
  0xc4   : > { %4213 = vmatmul.mubr.msk.f32.gmra.mxu0 %vm441_vm1, %v4706_v48  ;;  %v6471_v48 = vld [vmem:[#allocation40_spill] sm:$0xff] }
  0xc5   : > { %4163 = vmatmul.mubr.msk.f32.gmra.mxu1 %vm441_vm1, %v5005_v21  ;;  %4215 = vmatprep.mubr.msk.f32.mxu0 %vm441_vm1, %v4723_v55  ;;  %v6472_v55 = vld [vmem:[#allocation41_spill] sm:$0xff] }
  0xc6   : > { %4165 = vmatprep.mubr.msk.f32.mxu1 %vm441_vm1, %v5011_v10 }
  0xc8   : > { %4216 = vmatmul.mubr.msk.f32.gmra.mxu0 %vm441_vm1, %v4738_v61 }
  0xc9   : > { %4166 = vmatmul.mubr.msk.f32.gmra.mxu1 %vm441_vm1, %v5022_v60  ;;  %4218 = vmatprep.mubr.msk.f32.mxu0 %vm441_vm1, %v4781_v25  ;;  %v6474_v25 = vld [vmem:[#allocation43_spill] sm:$0xff] }
  0xca   : > { %4168 = vmatprep.mubr.msk.f32.mxu1 %vm441_vm1, %v5028_v49 }
  0xcc   : > { %4219 = vmatmul.mubr.msk.f32.gmra.mxu0 %vm441_vm1, %v4784_v30  ;;  %v6475_v30 = vld [vmem:[#allocation44_spill] sm:$0xff] }
  0xcd   : > { %4169 = vmatmul.mubr.msk.f32.gmra.mxu1 %vm441_vm1, %v6468_v33  ;;  %4221 = vmatprep.mubr.msk.f32.mxu0 %vm441_vm1, %v4825_v59 }
  0xce   : > { %4171 = vmatprep.mubr.msk.f32.mxu1 %vm441_vm1, %v5045_v28 }
  0xd0   : > { %4222 = vmatmul.mubr.msk.f32.gmra.mxu0 %vm441_vm1, %v4828_v1 }
  0xd1   : > { %4172 = vmatmul.mubr.msk.f32.gmra.mxu1 %vm441_vm1, %v6469_v34  ;;  %4224 = vmatprep.mubr.msk.f32.mxu0 %vm441_vm1, %v4869_v24  ;;  %v6476_v24 = vld [vmem:[#allocation45_spill] sm:$0xff] }
  0xd2   : > { %4174 = vmatprep.mubr.msk.f32.mxu1 %vm441_vm1, %v5062_v37 }
  0xd4   : > { %4225 = vmatmul.mubr.msk.f32.gmra.mxu0 %vm441_vm1, %v4872_v40  ;;  %v6477_v40 = vld [vmem:[#allocation46_spill] sm:$0xff] }
  0xd5   : > { %4175 = vmatmul.mubr.msk.f32.gmra.mxu1 %vm441_vm1, %v6470_v47  ;;  %4227 = vmatprep.mubr.msk.f32.mxu0 %vm441_vm1, %v4601_v5 }
  0xd6   : > { %4177 = vmatprep.mubr.msk.f32.mxu1 %vm441_vm1, %v5079_v4 }
  0xd8   : > { %4228 = vmatmul.mubr.msk.f32.gmra.mxu0 %vm441_vm1, %v4606_v8 }
  0xd9   : > { %4178 = vmatmul.mubr.msk.f32.gmra.mxu1 %vm441_vm1, %v6471_v48  ;;  %4230 = vmatprep.mubr.msk.f32.mxu0 %vm441_vm1, %v4627_v19  ;;  %v6473_v19 = vld [vmem:[#allocation42_spill] sm:$0xff] }
  0xda   : > { %4180 = vmatprep.mubr.msk.f32.mxu1 %vm441_vm1, %v5096_v45 }
  0xdc   : > { %4231 = vmatmul.mubr.msk.f32.gmra.mxu0 %vm441_vm1, %v4630_v20 }
  0xdd   : > { %4181 = vmatmul.mubr.msk.f32.gmra.mxu1 %vm441_vm1, %v6472_v55  ;;  %4233 = vmatprep.mubr.msk.f32.mxu0 %vm441_vm1, %v4671_v35 }
  0xde   : > { %4183 = vmatprep.mubr.msk.f32.mxu1 %vm441_vm1, %v5113_v26 }
  0xe0   : > { %v5462_v5 = vpop.f32.mrf.mxu0  ;;  %4234 = vmatmul.mubr.msk.f32.gmra.mxu0 %vm441_vm1, %v4681_v39 }
  0xe1   : > { %v5466_v8 = vpop.f32.mrf.mxu1  ;;  %4184 = vmatmul.mubr.msk.f32.gmra.mxu1 %vm441_vm1, %v6473_v19  ;;  %4236 = vmatprep.mubr.msk.f32.mxu0 %vm441_vm1, %v4717_v53 }
  0xe2   : > { %v5472_v20 = vpop.f32.mrf.mxu0  ;;  %4186 = vmatprep.mubr.msk.f32.mxu1 %vm441_vm1, %v5130_v42 }
  0xe3   : > { %v5476_v35 = vpop.f32.mrf.mxu1 }
  0xe4   : > { %v5478_v61 = vpop.f32.mrf.mxu0  ;;  %4237 = vmatmul.mubr.msk.f32.gmra.mxu0 %vm441_vm1, %v4720_v54 }
  0xe5   : > { %v5482_v39 = vpop.f32.mrf.mxu1  ;;  %4187 = vmatmul.mubr.msk.f32.gmra.mxu1 %vm441_vm1, %v6474_v25  ;;  %4239 = vmatprep.mubr.msk.f32.mxu0 %vm441_vm1, %v4754_v2 }
  0xe6   : > { %v5488_v53 = vpop.f32.mrf.mxu0  ;;  %4189 = vmatprep.mubr.msk.f32.mxu1 %vm441_vm1, %v6475_v30 }
  0xe7   : > { %v5492_v59 = vpop.f32.mrf.mxu1 }
  0xe8   : > { %v5494_v1 = vpop.f32.mrf.mxu0  ;;  %4240 = vmatmul.mubr.msk.f32.gmra.mxu0 %vm441_vm1, %v4757_v6 }
  0xe9   : > { %v5498_v54 = vpop.f32.mrf.mxu1  ;;  %4190 = vmatmul.mubr.msk.f32.gmra.mxu1 %vm441_vm1, %v6476_v24  ;;  %4242 = vmatprep.mubr.msk.f32.mxu0 %vm441_vm1, %v4789_v31 }
  0xea   : > { %v5504_v2 = vpop.f32.mrf.mxu0  ;;  %4192 = vmatprep.mubr.msk.f32.mxu1 %vm441_vm1, %v6477_v40 }
  0xeb   : > { %v5508_v7 = vpop.f32.mrf.mxu1 }
  0xec   : > { %v5510_v44 = vpop.f32.mrf.mxu0  ;;  %4243 = vmatmul.mubr.msk.f32.gmra.mxu0 %vm441_vm1, %v4792_v32 }
  0xed   : > { %v5514_v6 = vpop.f32.mrf.mxu1  ;;  %4193 = vmatmul.mubr.msk.f32.gmra.mxu1 %vm441_vm1, %v6478_v22  ;;  %4245 = vmatprep.mubr.msk.f32.mxu0 %vm441_vm1, %v4833_v11 }
  0xee   : > { %v5520_v31 = vpop.f32.mrf.mxu0  ;;  %4195 = vmatprep.mubr.msk.f32.mxu1 %vm441_vm1, %v5181_v38 }
  0xef   : > { %v5524_v18 = vpop.f32.mrf.mxu1 }
  0xf0   : > { %v5526_v3 = vpop.f32.mrf.mxu0  ;;  %4246 = vmatmul.mubr.msk.f32.gmra.mxu0 %vm441_vm1, %v6440_v0  ;;  %v1959_v0 = vrot.slane %v5350_v41, 2 }
  0xf1   : > { %v5530_v32 = vpop.f32.mrf.mxu1  ;;  %4196 = vmatmul.mubr.msk.f32.gmra.mxu1 %vm441_vm1, %v5192_v58  ;;  %4248 = vmatprep.mubr.msk.f32.mxu0 %vm441_vm1, %v4877_v51 }
  0xf2   : > { %6479 = vst [vmem:[#allocation9_spill] sm:$0xff] %v5530_v32  ;;  %v5536_v11 = vpop.f32.mrf.mxu0  ;;  %4198 = vmatprep.mubr.msk.f32.mxu1 %vm441_vm1, %v5198_v56  ;;  %v5578_v32 = vld [vmem:[%s4592_s13 + $0x1a0] sm:$0xff] }
  0xf3   : > { %v5541_v27 = vpop.f32.mrf.mxu1 }
  0xf4   : > { %6480 = vst [vmem:[#allocation11_spill] sm:$0xff] %v5541_v27  ;;  %v5544_v62 = vpop.f32.mrf.mxu0  ;;  %4249 = vmatmul.mubr.msk.f32.gmra.mxu0 %vm441_vm1, %v6441_v16  ;;  %v1961_v27 = vrot.slane %v5363_v52, 2  ;;  %v5565_v16 = vsel %vm1020_vm2, %v1958_v57, %v1959_v0 }
  0xf5   : > { %v5548_v23 = vpop.f32.mrf.mxu1  ;;  %4199 = vmatmul.mubr.msk.f32.gmra.mxu1 %vm441_vm1, %v5209_v63  ;;  %4251 = vmatprep.mubr.msk.f32.mxu0 %vm441_vm1, %v5347_v29  ;;  %6483 = vst [vmem:[#allocation17_spill] sm:$0xff] %v5565_v16 }
  0xf6   : > { %6481 = vst [vmem:[#allocation13_spill] sm:$0xff] %v5548_v23  ;;  %v5554_v51 = vpop.f32.mrf.mxu0  ;;  %4201 = vmatprep.mubr.msk.f32.mxu1 %vm441_vm1, %v5215_v13  ;;  %v5585_v57 = vsel %vm1020_vm2, %v1959_v0, %v1961_v27 }
  0xf7   : > { %v5562_v43 = vpop.f32.mrf.mxu1  ;;  %6485 = vst [vmem:[#allocation37_spill] sm:$0xff] %v5585_v57 }
  0xf8   : > { %6482 = vst [vmem:[#allocation15_spill] sm:$0xff] %v5562_v43  ;;  %v5567_v23 = vpop.f32.mrf.mxu0  ;;  %4252 = vmatmul.mubr.msk.f32.gmra.mxu0 %vm441_vm1, %v5350_v41 }
  0xf9   : > { %v5571_v29 = vpop.f32.mrf.mxu1  ;;  %4202 = vmatmul.mubr.msk.f32.gmra.mxu1 %vm441_vm1, %v5224_v15  ;;  %4254 = vmatprep.mubr.msk.f32.mxu0 %vm441_vm1, %v5559_v36 }
  0xfa   : > { %6484 = vst [vmem:[#allocation22_spill] sm:$0xff] %v5571_v29  ;;  %v5580_v52 = vpop.f32.mrf.mxu0  ;;  %4204 = vmatprep.mubr.msk.f32.mxu1 %vm441_vm1, %v5565_v16 }
  0xfb   : > { %v5587_v43 = vpop.f32.mrf.mxu1 }
  0xfc   : > { %6486 = vst [vmem:[#allocation38_spill] sm:$0xff] %v5587_v43  ;;  %v5589_v41 = vpop.f32.mrf.mxu0  ;;  %4255 = vmatmul.mubr.msk.f32.gmra.mxu0 %vm441_vm1, %v5578_v32 }
  0xfd   : > { %v5593_v29 = vpop.f32.mrf.mxu1  ;;  %4205 = vmatmul.mubr.msk.f32.gmra.mxu1 %vm441_vm1, %v5585_v57  ;;  %4309 = vmatprep.mubr.msk.f32.mxu0 %vm441_vm1, %v4990_v12 }
  0xfe   : > { %6487 = vst [vmem:[#allocation39_spill] sm:$0xff] %v5593_v29  ;;  %v5599_v15 = vpop.f32.mrf.mxu0  ;;  %4259 = vmatprep.mubr.msk.f32.mxu1 %vm441_vm1, %v6445_v14 }
  0xff   : > { %v5603_v27 = vpop.f32.mrf.mxu1 }
 0x100   : > { %6488 = vst [vmem:[#allocation40_spill] sm:$0xff] %v5603_v27  ;;  %v4011_v0 = vpop.f32.mrf.mxu0  ;;  %4310 = vmatmul.mubr.msk.f32.vlgmr.msra.gmra.mxu0 %vm441_vm1, %v5005_v21 }
 0x101   : > { %v3961_v43 = vpop.f32.mrf.mxu1  ;;  %4260 = vmatmul.mubr.msk.f32.vlgmr.msra.gmra.mxu1 %vm441_vm1, %v6446_v50  ;;  %4312 = vmatprep.mubr.msk.f32.mxu0 %vm441_vm1, %v5011_v10 }
 0x102   : > { %v867_v12 = vadd.f32 %v3961_v43, %v5462_v5  ;;  %v1233_v29 = vpop.f32.mrf.mxu0  ;;  %4262 = vmatprep.mubr.msk.f32.mxu1 %vm441_vm1, %v6447_v17  ;;  %v6489_v17 = vld [vmem:[#allocation19_spill] sm:$0xff] }
 0x103   : > { %v861_v14 = vpop.f32.mrf.mxu1 }
 0x104   : > { %v5614_v57 = vadd.f32 %v4011_v0, %v867_v12  ;;  %v862_v27 = vadd.f32 %v861_v14, %v5472_v20  ;;  %v4014_v16 = vpop.f32.mrf.mxu0  ;;  %4313 = vmatmul.mubr.msk.f32.gmra.mxu0 %vm441_vm1, %v5022_v60  ;;  %v6491_v14 = vld [vmem:[#allocation27_spill] sm:$0xff] }
 0x105   : > { %v3964_v21 = vpop.f32.mrf.mxu1  ;;  %4263 = vmatmul.mubr.msk.f32.gmra.mxu1 %vm441_vm1, %v6448_v9  ;;  %4315 = vmatprep.mubr.msk.f32.mxu0 %vm441_vm1, %v5028_v49 }
 0x106   : > { %v5623_v43 = vadd.f32 %v1233_v29, %v862_v27  ;;  %v877_v10 = vadd.f32 %v3964_v21, %v5478_v61  ;;  %v1243_v50 = vpop.f32.mrf.mxu0  ;;  %4265 = vmatprep.mubr.msk.f32.mxu1 %vm441_vm1, %v6489_v17 }
 0x107   : > { %v871_v5 = vpop.f32.mrf.mxu1 }
 0x108   : > { %v5628_v20 = vadd.f32 %v4014_v16, %v877_v10  ;;  %v872_v60 = vadd.f32 %v871_v5, %v5488_v53  ;;  %v4017_v0 = vpop.f32.mrf.mxu0  ;;  %4316 = vmatmul.mubr.msk.f32.gmra.mxu0 %vm441_vm1, %v6468_v33  ;;  %v6490_v16 = vld [vmem:[#allocation24_spill] sm:$0xff]  ;;  %v6492_v10 = vld [vmem:[#allocation29_spill] sm:$0xff] }
 0x109   : > { %v3967_v9 = vpop.f32.mrf.mxu1  ;;  %4266 = vmatmul.mubr.msk.f32.gmra.mxu1 %vm441_vm1, %v6450_v46  ;;  %4318 = vmatprep.mubr.msk.f32.mxu0 %vm441_vm1, %v5045_v28 }
 0x10a   : > { %v5637_v49 = vadd.f32 %v1243_v50, %v872_v60  ;;  %v887_v61 = vadd.f32 %v3967_v9, %v5494_v1  ;;  %v1253_v29 = vpop.f32.mrf.mxu0  ;;  %4268 = vmatprep.mubr.msk.f32.mxu1 %vm441_vm1, %v6490_v16  ;;  %v6493_v60 = vld [vmem:[#allocation31_spill] sm:$0xff]  ;;  %v6494_v9 = vld [vmem:[#allocation33_spill] sm:$0xff] }
 0x10b   : > { %v881_v53 = vpop.f32.mrf.mxu1 }
 0x10c   : > { %v5642_v27 = vadd.f32 %v4017_v0, %v887_v61  ;;  %v882_v33 = vadd.f32 %v881_v53, %v5504_v2  ;;  %v4020_v12 = vpop.f32.mrf.mxu0  ;;  %4319 = vmatmul.mubr.msk.f32.gmra.mxu0 %vm441_vm1, %v6469_v34  ;;  %v6495_v53 = vld [vmem:[#allocation35_spill] sm:$0xff] }
 0x10d   : > { %v3970_v46 = vpop.f32.mrf.mxu1  ;;  %4269 = vmatmul.mubr.msk.f32.gmra.mxu1 %vm441_vm1, %v6491_v14  ;;  %4321 = vmatprep.mubr.msk.f32.mxu0 %vm441_vm1, %v5062_v37 }
 0x10e   : > { %v5651_v28 = vadd.f32 %v1253_v29, %v882_v33  ;;  %v897_v1 = vadd.f32 %v3970_v46, %v5510_v44  ;;  %v1263_v21 = vpop.f32.mrf.mxu0  ;;  %4271 = vmatprep.mubr.msk.f32.mxu1 %vm441_vm1, %v6492_v10 }
 0x10f   : > { %v891_v2 = vpop.f32.mrf.mxu1 }
 0x110   : > { %v5656_v50 = vadd.f32 %v4020_v12, %v897_v1  ;;  %v892_v34 = vadd.f32 %v891_v2, %v5520_v31  ;;  %v4023_v17 = vpop.f32.mrf.mxu0  ;;  %4322 = vmatmul.mubr.msk.f32.gmra.mxu0 %vm441_vm1, %v6470_v47  ;;  %v6496_v12 = vld [vmem:[#allocation5_spill] sm:$0xff]  ;;  %v6498_v2 = vld [vmem:[#allocation8_spill] sm:$0xff] }
 0x111   : > { %v3973_v5 = vpop.f32.mrf.mxu1  ;;  %4272 = vmatmul.mubr.msk.f32.gmra.mxu1 %vm441_vm1, %v6493_v60  ;;  %4324 = vmatprep.mubr.msk.f32.mxu0 %vm441_vm1, %v5079_v4  ;;  %v6499_v60 = vld [vmem:[#allocation10_spill] sm:$0xff] }
 0x112   : > { %v5665_v37 = vadd.f32 %v1263_v21, %v892_v34  ;;  %v907_v44 = vadd.f32 %v3973_v5, %v5526_v3  ;;  %v1273_v0 = vpop.f32.mrf.mxu0  ;;  %4274 = vmatprep.mubr.msk.f32.mxu1 %vm441_vm1, %v6494_v9  ;;  %v6497_v21 = vld [vmem:[#allocation6_spill] sm:$0xff] }
 0x113   : > { %v901_v31 = vpop.f32.mrf.mxu1 }
 0x114   : > { %v5670_v61 = vadd.f32 %v4023_v17, %v907_v44  ;;  %v902_v47 = vadd.f32 %v901_v31, %v5536_v11  ;;  %v4026_v29 = vpop.f32.mrf.mxu0  ;;  %4325 = vmatmul.mubr.msk.f32.gmra.mxu0 %vm441_vm1, %v6471_v48 }
 0x115   : > { %v3976_v16 = vpop.f32.mrf.mxu1  ;;  %4275 = vmatmul.mubr.msk.f32.gmra.mxu1 %vm441_vm1, %v6495_v53  ;;  %4327 = vmatprep.mubr.msk.f32.mxu0 %vm441_vm1, %v5096_v45  ;;  %v6502_v53 = vld [vmem:[#allocation16_spill] sm:$0xff] }
 0x116   : > { %v5679_v4 = vadd.f32 %v1273_v0, %v902_v47  ;;  %v917_v3 = vadd.f32 %v3976_v16, %v5544_v62  ;;  %v1283_v33 = vpop.f32.mrf.mxu0  ;;  %4277 = vmatprep.mubr.msk.f32.mxu1 %vm441_vm1, %v6496_v12  ;;  %v6500_v0 = vld [vmem:[#allocation12_spill] sm:$0xff] }
 0x117   : > { %v911_v11 = vpop.f32.mrf.mxu1 }
 0x118   : > { %v5684_v46 = vadd.f32 %v4026_v29, %v917_v3  ;;  %v912_v48 = vadd.f32 %v911_v11, %v5554_v51  ;;  %v4029_v14 = vpop.f32.mrf.mxu0  ;;  %4328 = vmatmul.mubr.msk.f32.gmra.mxu0 %vm441_vm1, %v6472_v55  ;;  %v6501_v29 = vld [vmem:[#allocation14_spill] sm:$0xff] }
 0x119   : > { %v3979_v1 = vpop.f32.mrf.mxu1  ;;  %4278 = vmatmul.mubr.msk.f32.gmra.mxu1 %vm441_vm1, %v6497_v21  ;;  %4330 = vmatprep.mubr.msk.f32.mxu0 %vm441_vm1, %v5113_v26  ;;  %v6503_v11 = vld [vmem:[#allocation18_spill] sm:$0xff] }
 0x11a   : > { %v5693_v62 = vadd.f32 %v1283_v33, %v912_v48  ;;  %v927_v45 = vadd.f32 %v3979_v1, %v5567_v23  ;;  %v1293_v10 = vpop.f32.mrf.mxu0  ;;  %4280 = vmatprep.mubr.msk.f32.mxu1 %vm441_vm1, %v6498_v2 }
 0x11b   : > { %v921_v51 = vpop.f32.mrf.mxu1 }
 0x11c   : > { %v5698_v34 = vadd.f32 %v4029_v14, %v927_v45  ;;  %v922_v55 = vadd.f32 %v921_v51, %v5580_v52  ;;  %v4032_v17 = vpop.f32.mrf.mxu0  ;;  %4331 = vmatmul.mubr.msk.f32.gmra.mxu0 %vm441_vm1, %v6473_v19  ;;  %v6504_v14 = vld [vmem:[#allocation20_spill] sm:$0xff]  ;;  %v6506_v51 = vld [vmem:[#allocation25_spill] sm:$0xff] }
 0x11d   : > { %v3982_v5 = vpop.f32.mrf.mxu1  ;;  %4281 = vmatmul.mubr.msk.f32.gmra.mxu1 %vm441_vm1, %v6499_v60  ;;  %4333 = vmatprep.mubr.msk.f32.mxu0 %vm441_vm1, %v5130_v42  ;;  %v6507_v60 = vld [vmem:[#allocation28_spill] sm:$0xff] }
 0x11e   : > { %v5707_v26 = vadd.f32 %v1293_v10, %v922_v55  ;;  %v937_v23 = vadd.f32 %v3982_v5, %v5589_v41  ;;  %v1303_v44 = vpop.f32.mrf.mxu0  ;;  %4283 = vmatprep.mubr.msk.f32.mxu1 %vm441_vm1, %v6500_v0  ;;  %v6505_v10 = vld [vmem:[#allocation23_spill] sm:$0xff] }
 0x11f   : > { %v931_v52 = vpop.f32.mrf.mxu1 }
 0x120   : > { %v5712_v9 = vadd.f32 %v4032_v17, %v937_v23  ;;  %v932_v19 = vadd.f32 %v931_v52, %v5599_v15  ;;  %v4035_v31 = vpop.f32.mrf.mxu0  ;;  %4334 = vmatmul.mubr.msk.f32.gmra.mxu0 %vm441_vm1, %v6474_v25 }
 0x121   : > { %v3985_v47 = vpop.f32.mrf.mxu1  ;;  %4284 = vmatmul.mubr.msk.f32.gmra.mxu1 %vm441_vm1, %v6501_v29  ;;  %4336 = vmatprep.mubr.msk.f32.mxu0 %vm441_vm1, %v6475_v30  ;;  %v6510_v29 = vld [vmem:[#allocation9_spill] sm:$0xff] }
 0x122   : > { %v5721_v42 = vadd.f32 %v1303_v44, %v932_v19  ;;  %v947_v41 = vadd.f32 %v3985_v47, %v5466_v8  ;;  %v1313_v16 = vpop.f32.mrf.mxu0  ;;  %4286 = vmatprep.mubr.msk.f32.mxu1 %vm441_vm1, %v6502_v53  ;;  %v6508_v44 = vld [vmem:[#allocation30_spill] sm:$0xff]  ;;  %v2492_v53 = vrot.slane %v5559_v36, 1 }
 0x123   : > { %v941_v15 = vpop.f32.mrf.mxu1 }
 0x124   : > { %v5726_v3 = vadd.f32 %v4035_v31, %v947_v41  ;;  %v942_v25 = vadd.f32 %v941_v15, %v5476_v35  ;;  %v4038_v33 = vpop.f32.mrf.mxu0  ;;  %4337 = vmatmul.mubr.msk.f32.gmra.mxu0 %vm441_vm1, %v6476_v24  ;;  %v2761_v31 = vrot.slane %v5578_v32, 2  ;;  %v2493_v15 = vrot.slane %v5578_v32, 1  ;;  %v6516_v32 = vld [vmem:[#allocation13_spill] sm:$0xff] }
 0x125   : > { %v3988_v12 = vpop.f32.mrf.mxu1  ;;  %4287 = vmatmul.mubr.msk.f32.gmra.mxu1 %vm441_vm1, %v6503_v11  ;;  %4339 = vmatprep.mubr.msk.f32.mxu0 %vm441_vm1, %v6477_v40 }
 0x126   : > { %v5735_v8 = vadd.f32 %v1313_v16, %v942_v25  ;;  %v957_v30 = vadd.f32 %v3988_v12, %v5482_v39  ;;  %v1323_v48 = vpop.f32.mrf.mxu0  ;;  %4289 = vmatprep.mubr.msk.f32.mxu1 %vm441_vm1, %v6504_v14  ;;  %v6511_v16 = vld [vmem:[#allocation34_spill] sm:$0xff]  ;;  %v6514_v14 = vld [vmem:[#allocation36_spill] sm:$0xff] }
 0x127   : > { %v951_v35 = vpop.f32.mrf.mxu1 }
 0x128   : > { %v5740_v1 = vadd.f32 %v4038_v33, %v957_v30  ;;  %v952_v24 = vadd.f32 %v951_v35, %v5492_v59  ;;  %v4041_v21 = vpop.f32.mrf.mxu0  ;;  %4340 = vmatmul.mubr.msk.f32.gmra.mxu0 %vm441_vm1, %v6478_v22  ;;  %v6513_v30 = vld [vmem:[#allocation21_spill] sm:$0xff] }
 0x129   : > { %v3991_v45 = vpop.f32.mrf.mxu1  ;;  %4290 = vmatmul.mubr.msk.f32.gmra.mxu1 %vm441_vm1, %v6505_v10  ;;  %4342 = vmatprep.mubr.msk.f32.mxu0 %vm441_vm1, %v5181_v38  ;;  %v6515_v35 = vld [vmem:[#allocation17_spill] sm:$0xff]  ;;  %v6517_v10 = vld [vmem:[#allocation26_spill] sm:$0xff] }
 0x12a   : > { %v5749_v39 = vadd.f32 %v1323_v48, %v952_v24  ;;  %v967_v40 = vadd.f32 %v3991_v45, %v5498_v54  ;;  %v1333_v2 = vpop.f32.mrf.mxu0  ;;  %4292 = vmatprep.mubr.msk.f32.mxu1 %vm441_vm1, %v6506_v51 }
 0x12b   : > { %v961_v59 = vpop.f32.mrf.mxu1 }
 0x12c   : > { %v5754_v55 = vadd.f32 %v4041_v21, %v967_v40  ;;  %v962_v22 = vadd.f32 %v961_v59, %v5508_v7  ;;  %v4044_v17 = vpop.f32.mrf.mxu0  ;;  %4343 = vmatmul.mubr.msk.f32.gmra.mxu0 %vm441_vm1, %v5192_v58  ;;  %v2494_v59 = vsel %vm358_vm0, %v2492_v53, %v2493_v15 }
 0x12d   : > { %v3994_v5 = vpop.f32.mrf.mxu1  ;;  %4293 = vmatmul.mubr.msk.f32.gmra.mxu1 %vm441_vm1, %v6507_v60  ;;  %4345 = vmatprep.mubr.msk.f32.mxu0 %vm441_vm1, %v5198_v56  ;;  %v6509_v56 = vld [vmem:[#allocation32_spill] sm:$0xff] }
 0x12e   : > { %v5763_v38 = vadd.f32 %v1333_v2, %v962_v22  ;;  %v977_v54 = vadd.f32 %v3994_v5, %v5514_v6  ;;  %v1343_v23 = vpop.f32.mrf.mxu0  ;;  %4295 = vmatprep.mubr.msk.f32.mxu1 %vm441_vm1, %v6508_v44  ;;  %v2760_v6 = vrot.slane %v5559_v36, 2  ;;  %v6520_v44 = vld [vmem:[#allocation7_spill] sm:$0xff] }
 0x12f   : > { %v971_v7 = vpop.f32.mrf.mxu1 }
 0x130   : > { %v5768_v0 = vadd.f32 %v4044_v17, %v977_v54  ;;  %v972_v58 = vadd.f32 %v971_v7, %v5524_v18  ;;  %v4047_v52 = vpop.f32.mrf.mxu0  ;;  %4346 = vmatmul.mubr.msk.f32.gmra.mxu0 %vm441_vm1, %v5209_v63  ;;  %v308_v63 = vld [vmem:[%s4592_s13 + $0x1a8] sm:$0x3]  ;;  %v2762_v40 = vsel %vm1020_vm2, %v2760_v6, %v2761_v31  ;;  %v6518_v17 = vld [vmem:[#allocation15_spill] sm:$0xff]  ;;  %v6519_v54 = vld [vmem:[#allocation37_spill] sm:$0xff] }
 0x131   : > { %v3997_v19 = vpop.f32.mrf.mxu1  ;;  %4296 = vmatmul.mubr.msk.f32.gmra.mxu1 %vm441_vm1, %v6509_v56  ;;  %4348 = vmatprep.mubr.msk.f32.mxu0 %vm441_vm1, %v5215_v13  ;;  %v6512_v13 = vld [vmem:[#allocation11_spill] sm:$0xff]  ;;  %v2763_v24 = vrot.slane %v308_v63, 2  ;;  %v2495_v2 = vrot.slane %v308_v63, 1 }
 0x132   : > { %v5779_v47 = vadd.f32 %v1343_v23, %v972_v58  ;;  %v987_v41 = vadd.f32 %v3997_v19, %v6510_v29  ;;  %v1353_v18 = vpop.f32.mrf.mxu0  ;;  %4298 = vmatprep.mubr.msk.f32.mxu1 %vm441_vm1, %v6511_v16 }
 0x133   : > { %v981_v25 = vpop.f32.mrf.mxu1  ;;  %v2764_v7 = vsel %vm1020_vm2, %v2761_v31, %v2763_v24  ;;  %v2496_v6 = vsel %vm358_vm0, %v2493_v15, %v2495_v2  ;;  %v6524_v15 = vld [vmem:[#allocation40_spill] sm:$0xff] }
 0x134   : > { %v5787_v33 = vadd.f32 %v4047_v52, %v987_v41  ;;  %v982_v12 = vadd.f32 %v981_v25, %v6512_v13  ;;  %v4050_v11 = vpop.f32.mrf.mxu0  ;;  %4349 = vmatmul.mubr.msk.f32.gmra.mxu0 %vm441_vm1, %v6513_v30  ;;  %v6521_v52 = vld [vmem:[#allocation22_spill] sm:$0xff]  ;;  %v6523_v25 = vld [vmem:[#allocation39_spill] sm:$0xff] }
 0x135   : > { %v4000_v48 = vpop.f32.mrf.mxu1  ;;  %4299 = vmatmul.mubr.msk.f32.gmra.mxu1 %vm441_vm1, %v6514_v14  ;;  %4351 = vmatprep.mubr.msk.f32.mxu0 %vm441_vm1, %v6515_v35 }
 0x136   : > { %v5796_v36 = vadd.f32 %v1353_v18, %v982_v12  ;;  %v997_v21 = vadd.f32 %v4000_v48, %v6516_v32  ;;  %v1363_v45 = vpop.f32.mrf.mxu0  ;;  %4301 = vmatprep.mubr.msk.f32.mxu1 %vm441_vm1, %v6517_v10  ;;  %v6522_v18 = vld [vmem:[#allocation38_spill] sm:$0xff] }
 0x137   : > { %v991_v51 = vpop.f32.mrf.mxu1 }
 0x138   : > { %v5803_v22 = vadd.f32 %v4050_v11, %v997_v21  ;;  %v992_v5 = vadd.f32 %v991_v51, %v6518_v17  ;;  %v4053_v60 = vpop.f32.mrf.mxu0  ;;  %4352 = vmatmul.mubr.msk.f32.gmra.mxu0 %vm441_vm1, %v6519_v54 }
 0x139   : > { %v4003_v23 = vpop.f32.mrf.mxu1  ;;  %4302 = vmatmul.mubr.msk.f32.gmra.mxu1 %vm441_vm1, %v6520_v44  ;;  %4354 = vmatprep.mubr.msk.f32.mxu0 %vm441_vm1, %v2762_v40 }
 0x13a   : > { %v5812_v58 = vadd.f32 %v1363_v45, %v992_v5  ;;  %v1007_v19 = vadd.f32 %v4003_v23, %v6521_v52  ;;  %v1373_v56 = vpop.f32.mrf.mxu0  ;;  %4304 = vmatprep.mubr.msk.f32.mxu1 %vm441_vm1, %v2494_v59 }
 0x13b   : > { %v1001_v29 = vpop.f32.mrf.mxu1 }
 0x13c   : > { %v5817_v41 = vadd.f32 %v4053_v60, %v1007_v19  ;;  %v1002_v16 = vadd.f32 %v1001_v29, %v6522_v18  ;;  %v4056_v63 = vpop.f32.mrf.mxu0  ;;  %4355 = vmatmul.mubr.msk.f32.gmra.mxu0 %vm441_vm1, %v2764_v7 }
 0x13d   : > { %v4006_v53 = vpop.f32.mrf.mxu1  ;;  %4305 = vmatmul.mubr.msk.f32.gmra.mxu1 %vm441_vm1, %v2496_v6 }
 0x13e   : > { %v5822_v31 = vadd.f32 %v1373_v56, %v1002_v16  ;;  %v1017_v13 = vadd.f32 %v4006_v53, %v6523_v25  ;;  %v1383_v12 = vpop.f32.mrf.mxu0 }
 0x13f   : > { %v1011_v11 = vpop.f32.mrf.mxu1 }
 0x140   : > { %v5825_v30 = vadd.f32 %v4056_v63, %v1017_v13  ;;  %v1012_v48 = vadd.f32 %v1011_v11, %v6524_v15  ;;  %v4111_v14 = vpop.f32.mrf.mxu0 }
 0x141   : > { %v4061_v35 = vpop.f32.mrf.mxu1 }
 0x142   : > { %v5828_v24 = vadd.f32 %v1383_v12, %v1012_v48  ;;  %v1658_v32 = vadd.f32 %v4061_v35, %v5614_v57  ;;  %v1767_v21 = vpop.f32.mrf.mxu0 }
 0x143   : > { %v1498_v45 = vpop.f32.mrf.mxu1 }
 0x144   : > { %v5831_v10 = vadd.f32 %v4111_v14, %v1658_v32  ;;  %v1657_v40 = vadd.f32 %v1498_v45, %v5623_v43  ;;  %v4114_v2 = vpop.f32.mrf.mxu0 }
 0x145   : > { %v4064_v51 = vpop.f32.mrf.mxu1 }
 0x146   : > { %v5834_v59 = vadd.f32 %v1767_v21, %v1657_v40  ;;  %v1660_v17 = vadd.f32 %v4064_v51, %v5628_v20  ;;  %v1777_v5 = vpop.f32.mrf.mxu0 }
 0x147   : > { %v1508_v60 = vpop.f32.mrf.mxu1 }
 0x148   : > { %v5837_v54 = vadd.f32 %v4114_v2, %v1660_v17  ;;  %v1659_v23 = vadd.f32 %v1508_v60, %v5637_v49  ;;  %v4117_v44 = vpop.f32.mrf.mxu0 }
 0x149   : > { %v4067_v57 = vpop.f32.mrf.mxu1 }
 0x14a   : > { %v5840_v7 = vadd.f32 %v1777_v5, %v1659_v23  ;;  %v1662_v52 = vadd.f32 %v4067_v57, %v5642_v27  ;;  %v1787_v19 = vpop.f32.mrf.mxu0 }
 0x14b   : > { %v1518_v43 = vpop.f32.mrf.mxu1 }
 0x14c   : > { %v5843_v56 = vadd.f32 %v4117_v44, %v1662_v52  ;;  %v1661_v6 = vadd.f32 %v1518_v43, %v5651_v28  ;;  %v4120_v29 = vpop.f32.mrf.mxu0 }
 0x14d   : > { %v4070_v20 = vpop.f32.mrf.mxu1 }
 0x14e   : > { %v5846_v18 = vadd.f32 %v1787_v19, %v1661_v6  ;;  %v1664_v16 = vadd.f32 %v4070_v20, %v5656_v50  ;;  %v1797_v63 = vpop.f32.mrf.mxu0 }
 0x14f   : > { %v1528_v49 = vpop.f32.mrf.mxu1 }
 0x150   : > { %v5849_v53 = vadd.f32 %v4120_v29, %v1664_v16  ;;  %v1663_v25 = vadd.f32 %v1528_v49, %v5665_v37  ;;  %v4123_v13 = vpop.f32.mrf.mxu0 }
 0x151   : > { %v4073_v27 = vpop.f32.mrf.mxu1 }
 0x152   : > { %v5852_v12 = vadd.f32 %v1797_v63, %v1663_v25  ;;  %v1666_v11 = vadd.f32 %v4073_v27, %v5670_v61  ;;  %v1807_v15 = vpop.f32.mrf.mxu0 }
 0x153   : > { %v1538_v28 = vpop.f32.mrf.mxu1 }
 0x154   : > { %v5855_v48 = vadd.f32 %v4123_v13, %v1666_v11  ;;  %v1665_v14 = vadd.f32 %v1538_v28, %v5679_v4  ;;  %v4126_v35 = vpop.f32.mrf.mxu0 }
 0x155   : > { %v4076_v50 = vpop.f32.mrf.mxu1 }
 0x156   : > { %v5858_v32 = vadd.f32 %v1807_v15, %v1665_v14  ;;  %v1668_v21 = vadd.f32 %v4076_v50, %v5684_v46  ;;  %v1817_v45 = vpop.f32.mrf.mxu0 }
 0x157   : > { %v1548_v37 = vpop.f32.mrf.mxu1 }
 0x158   : > { %v5861_v40 = vadd.f32 %v4126_v35, %v1668_v21  ;;  %v1667_v2 = vadd.f32 %v1548_v37, %v5693_v62  ;;  %v4129_v51 = vpop.f32.mrf.mxu0 }
 0x159   : > { %v4079_v61 = vpop.f32.mrf.mxu1 }
 0x15a   : > { %v5864_v17 = vadd.f32 %v1817_v45, %v1667_v2  ;;  %v1670_v5 = vadd.f32 %v4079_v61, %v5698_v34  ;;  %v1827_v60 = vpop.f32.mrf.mxu0 }
 0x15b   : > { %v1558_v4 = vpop.f32.mrf.mxu1 }
 0x15c   : > { %v5867_v23 = vadd.f32 %v4129_v51, %v1670_v5  ;;  %v1669_v44 = vadd.f32 %v1558_v4, %v5707_v26  ;;  %v4132_v57 = vpop.f32.mrf.mxu0 }
 0x15d   : > { %v4082_v46 = vpop.f32.mrf.mxu1 }
 0x15e   : > { %v5870_v52 = vadd.f32 %v1827_v60, %v1669_v44  ;;  %v1672_v19 = vadd.f32 %v4082_v46, %v5712_v9  ;;  %v1837_v43 = vpop.f32.mrf.mxu0 }
 0x15f   : > { %v1568_v62 = vpop.f32.mrf.mxu1 }
 0x160   : > { %v5873_v6 = vadd.f32 %v4132_v57, %v1672_v19  ;;  %v1671_v29 = vadd.f32 %v1568_v62, %v5721_v42  ;;  %v4135_v20 = vpop.f32.mrf.mxu0 }
 0x161   : > { %v4085_v34 = vpop.f32.mrf.mxu1 }
 0x162   : > { %v5876_v16 = vadd.f32 %v1837_v43, %v1671_v29  ;;  %v1674_v63 = vadd.f32 %v4085_v34, %v5726_v3  ;;  %v1847_v49 = vpop.f32.mrf.mxu0 }
 0x163   : > { %v1578_v26 = vpop.f32.mrf.mxu1 }
 0x164   : > { %v5879_v25 = vadd.f32 %v4135_v20, %v1674_v63  ;;  %v1673_v13 = vadd.f32 %v1578_v26, %v5735_v8  ;;  %v4138_v27 = vpop.f32.mrf.mxu0 }
 0x165   : > { %v4088_v9 = vpop.f32.mrf.mxu1 }
 0x166   : > { %v5882_v11 = vadd.f32 %v1847_v49, %v1673_v13  ;;  %v1676_v15 = vadd.f32 %v4088_v9, %v5740_v1  ;;  %v1857_v28 = vpop.f32.mrf.mxu0 }
 0x167   : > { %v1588_v42 = vpop.f32.mrf.mxu1 }
 0x168   : > { %v5885_v14 = vadd.f32 %v4138_v27, %v1676_v15  ;;  %v1675_v35 = vadd.f32 %v1588_v42, %v5749_v39  ;;  %v4141_v50 = vpop.f32.mrf.mxu0 }
 0x169   : > { %v4091_v3 = vpop.f32.mrf.mxu1 }
 0x16a   : > { %6525 = vst [vmem:[#allocation41_spill] sm:$0xff] %v5885_v14  ;;  %v5888_v21 = vadd.f32 %v1857_v28, %v1675_v35  ;;  %v1678_v45 = vadd.f32 %v4091_v3, %v5754_v55  ;;  %v1867_v37 = vpop.f32.mrf.mxu0 }
 0x16b   : > { %v1598_v8 = vpop.f32.mrf.mxu1 }
 0x16c   : > { %6526 = vst [vmem:[#allocation42_spill] sm:$0xff] %v5888_v21  ;;  %v5891_v2 = vadd.f32 %v4141_v50, %v1678_v45  ;;  %v1677_v51 = vadd.f32 %v1598_v8, %v5763_v38  ;;  %v4144_v61 = vpop.f32.mrf.mxu0 }
 0x16d   : > { %v4094_v1 = vpop.f32.mrf.mxu1 }
 0x16e   : > { %6527 = vst [vmem:[#allocation43_spill] sm:$0xff] %v5891_v2  ;;  %v5894_v5 = vadd.f32 %v1867_v37, %v1677_v51  ;;  %v1680_v60 = vadd.f32 %v4094_v1, %v5768_v0  ;;  %v1877_v4 = vpop.f32.mrf.mxu0 }
 0x16f   : > { %v1608_v39 = vpop.f32.mrf.mxu1 }
 0x170   : > { %6528 = vst [vmem:[#allocation44_spill] sm:$0xff] %v5894_v5  ;;  %v5897_v44 = vadd.f32 %v4144_v61, %v1680_v60  ;;  %v1679_v57 = vadd.f32 %v1608_v39, %v5779_v47  ;;  %v4147_v46 = vpop.f32.mrf.mxu0 }
 0x171   : > { %v4097_v55 = vpop.f32.mrf.mxu1 }
 0x172   : > { %6529 = vst [vmem:[#allocation45_spill] sm:$0xff] %v5897_v44  ;;  %v5900_v19 = vadd.f32 %v1877_v4, %v1679_v57  ;;  %v1682_v43 = vadd.f32 %v4097_v55, %v5787_v33  ;;  %v1887_v62 = vpop.f32.mrf.mxu0 }
 0x173   : > { %v1618_v38 = vpop.f32.mrf.mxu1 }
 0x174   : > { %6530 = vst [vmem:[#allocation46_spill] sm:$0xff] %v5900_v19  ;;  %v5903_v29 = vadd.f32 %v4147_v46, %v1682_v43  ;;  %v1681_v20 = vadd.f32 %v1618_v38, %v5796_v36  ;;  %v4150_v34 = vpop.f32.mrf.mxu0 }
 0x175   : > { %v4100_v0 = vpop.f32.mrf.mxu1 }
 0x176   : > { %6531 = vst [vmem:[#allocation47_spill] sm:$0xff] %v5903_v29  ;;  %v5906_v63 = vadd.f32 %v1887_v62, %v1681_v20  ;;  %v1684_v49 = vadd.f32 %v4100_v0, %v5803_v22  ;;  %v1897_v26 = vpop.f32.mrf.mxu0 }
 0x177   : > { %v1628_v47 = vpop.f32.mrf.mxu1 }
 0x178   : > { %6532 = vst [vmem:[#allocation19_spill] sm:$0xff] %v5906_v63  ;;  %v5909_v13 = vadd.f32 %v4150_v34, %v1684_v49  ;;  %v1683_v27 = vadd.f32 %v1628_v47, %v5812_v58  ;;  %v4153_v9 = vpop.f32.mrf.mxu0 }
 0x179   : > { %v4103_v33 = vpop.f32.mrf.mxu1 }
 0x17a   : > { %6533 = vst [vmem:[#allocation24_spill] sm:$0xff] %v5909_v13  ;;  %v5912_v15 = vadd.f32 %v1897_v26, %v1683_v27  ;;  %v1686_v28 = vadd.f32 %v4103_v33, %v5817_v41  ;;  %v1907_v42 = vpop.f32.mrf.mxu0 }
 0x17b   : > { %v1638_v36 = vpop.f32.mrf.mxu1 }
 0x17c   : > { %6534 = vst [vmem:[#allocation27_spill] sm:$0xff] %v5912_v15  ;;  %v5915_v35 = vadd.f32 %v4153_v9, %v1686_v28  ;;  %v1685_v50 = vadd.f32 %v1638_v36, %v5822_v31  ;;  %v4156_v3 = vpop.f32.mrf.mxu0 }
 0x17d   : > { %v4106_v22 = vpop.f32.mrf.mxu1 }
 0x17e   : > { %6535 = vst [vmem:[#allocation29_spill] sm:$0xff] %v5915_v35  ;;  %v5918_v45 = vadd.f32 %v1907_v42, %v1685_v50  ;;  %v1688_v37 = vadd.f32 %v4106_v22, %v5825_v30  ;;  %v1917_v8 = vpop.f32.mrf.mxu0 }
 0x17f   : > { %v1648_v58 = vpop.f32.mrf.mxu1 }
 0x180   : > { %6536 = vst [vmem:[#allocation31_spill] sm:$0xff] %v5918_v45  ;;  %v5921_v51 = vadd.f32 %v4156_v3, %v1688_v37  ;;  %v1687_v61 = vadd.f32 %v1648_v58, %v5828_v24  ;;  %v5924_v1 = vpop.f32.mrf.mxu0 }
 0x181   : > { %v4161_v41 = vpop.f32.mrf.mxu1 }
 0x182   : > { %6537 = vst [vmem:[#allocation33_spill] sm:$0xff] %v5921_v51  ;;  %v5926_v60 = vadd.f32 %v1917_v8, %v1687_v61  ;;  %v5928_v4 = vpop.f32.mrf.mxu0 }
 0x183   : > { %v2035_v31 = vpop.f32.mrf.mxu1 }
 0x184   : > { %6538 = vst [vmem:[#allocation35_spill] sm:$0xff] %v5926_v60  ;;  %v5930_v39 = vpop.f32.mrf.mxu0 }
 0x185   : > { %v4164_v57 = vpop.f32.mrf.mxu1 }
 0x186   : > { %v5932_v46 = vpop.f32.mrf.mxu0 }
 0x187   : > { %v5934_v30 = vpop.f32.mrf.mxu1 }
 0x188   : > { %v5936_v55 = vpop.f32.mrf.mxu0 }
 0x189   : > { %v5938_v43 = vpop.f32.mrf.mxu1 }
 0x18a   : > { %v5940_v24 = vpop.f32.mrf.mxu0 }
 0x18b   : > { %v5942_v62 = vpop.f32.mrf.mxu1 }
 0x18c   : > { %v5944_v38 = vpop.f32.mrf.mxu0 }
 0x18d   : > { %v5946_v20 = vpop.f32.mrf.mxu1 }
 0x18e   : > { %v5948_v34 = vpop.f32.mrf.mxu0 }
 0x18f   : > { %v5950_v0 = vpop.f32.mrf.mxu1 }
 0x190   : > { %v5952_v49 = vpop.f32.mrf.mxu0 }
 0x191   : > { %v5954_v26 = vpop.f32.mrf.mxu1 }
 0x192   : > { %v5956_v47 = vpop.f32.mrf.mxu0 }
 0x193   : > { %v5958_v27 = vpop.f32.mrf.mxu1 }
 0x194   : > { %v5960_v9 = vpop.f32.mrf.mxu0 }
 0x195   : > { %v5962_v33 = vpop.f32.mrf.mxu1 }
 0x196   : > { %v5964_v28 = vpop.f32.mrf.mxu0 }
 0x197   : > { %v5966_v42 = vpop.f32.mrf.mxu1 }
 0x198   : > { %v5968_v36 = vpop.f32.mrf.mxu0 }
 0x199   : > { %v5970_v50 = vpop.f32.mrf.mxu1 }
 0x19a   : > { %v5972_v3 = vpop.f32.mrf.mxu0 }
 0x19b   : > { %v5974_v22 = vpop.f32.mrf.mxu1 }
 0x19c   : > { %v5976_v37 = vpop.f32.mrf.mxu0 }
 0x19d   : > { %v5978_v8 = vpop.f32.mrf.mxu1 }
 0x19e   : > { %v5980_v58 = vpop.f32.mrf.mxu0 }
 0x19f   : > { %v5982_v61 = vpop.f32.mrf.mxu1 }
 0x1a0   : > { %v5984_v60 = vpop.f32.mrf.mxu0 }
 0x1a1   : > { %v5986_v51 = vpop.f32.mrf.mxu1 }
 0x1a2   : > { %v5988_v45 = vpop.f32.mrf.mxu0 }
 0x1a3   : > { %6539 = vst [vmem:[#allocation5_spill] sm:$0xff] %v5988_v45  ;;  %v5990_v35 = vpop.f32.mrf.mxu1 }
 0x1a4   : > { %v5992_v15 = vpop.f32.mrf.mxu0 }
 0x1a5   : > { %6540 = vst [vmem:[#allocation6_spill] sm:$0xff] %v5992_v15  ;;  %v5994_v13 = vpop.f32.mrf.mxu1 }
 0x1a6   : > { %6541 = vst [vmem:[#allocation8_spill] sm:$0xff] %v5994_v13  ;;  %v5996_v63 = vpop.f32.mrf.mxu0 }
 0x1a7   : > { %6542 = vst [vmem:[#allocation10_spill] sm:$0xff] %v5996_v63  ;;  %v5998_v29 = vpop.f32.mrf.mxu1 }
 0x1a8   : > { %6543 = vst [vmem:[#allocation12_spill] sm:$0xff] %v5998_v29  ;;  %v6000_v19 = vpop.f32.mrf.mxu0 }
 0x1a9   : > { %6544 = vst [vmem:[#allocation14_spill] sm:$0xff] %v6000_v19  ;;  %v6002_v44 = vpop.f32.mrf.mxu1 }
 0x1aa   : > { %6545 = vst [vmem:[#allocation16_spill] sm:$0xff] %v6002_v44  ;;  %v6004_v5 = vpop.f32.mrf.mxu0 }
 0x1ab   : > { %6546 = vst [vmem:[#allocation18_spill] sm:$0xff] %v6004_v5  ;;  %v6006_v2 = vpop.f32.mrf.mxu1 }
 0x1ac   : > { %6547 = vst [vmem:[#allocation20_spill] sm:$0xff] %v6006_v2  ;;  %v6008_v21 = vpop.f32.mrf.mxu0 }
 0x1ad   : > { %6548 = vst [vmem:[#allocation23_spill] sm:$0xff] %v6008_v21  ;;  %v6010_v45 = vpop.f32.mrf.mxu1 }
 0x1ae   : > { %6549 = vst [vmem:[#allocation25_spill] sm:$0xff] %v6010_v45  ;;  %v6012_v14 = vpop.f32.mrf.mxu0 }
 0x1af   : > { %6550 = vst [vmem:[#allocation28_spill] sm:$0xff] %v6012_v14  ;;  %v6014_v15 = vpop.f32.mrf.mxu1 }
 0x1b0   : > { %6551 = vst [vmem:[#allocation30_spill] sm:$0xff] %v6014_v15  ;;  %v6016_v13 = vpop.f32.mrf.mxu0 }
 0x1b1   : > { %6552 = vst [vmem:[#allocation32_spill] sm:$0xff] %v6016_v13  ;;  %v6018_v63 = vpop.f32.mrf.mxu1 }
 0x1b2   : > { %6553 = vst [vmem:[#allocation9_spill] sm:$0xff] %v6018_v63  ;;  %v6020_v29 = vpop.f32.mrf.mxu0 }
 0x1b3   : > { %6554 = vst [vmem:[#allocation34_spill] sm:$0xff] %v6020_v29  ;;  %v6022_v19 = vpop.f32.mrf.mxu1  ;;  %v2195_v29 = vadd.f32 %v4161_v41, %v5831_v10  ;;  %v2196_v10 = vadd.f32 %v5934_v30, %v5840_v7  ;;  %v2198_v7 = vadd.f32 %v5942_v62, %v5846_v18 }
 0x1b4   : > { %6555 = vst [vmem:[#allocation11_spill] sm:$0xff] %v6022_v19  ;;  %v6024_v44 = vpop.f32.mrf.mxu0 }
 0x1b5   : > { %6556 = vst [vmem:[#allocation21_spill] sm:$0xff] %v6024_v44  ;;  %v6026_v5 = vpop.f32.mrf.mxu1 }
 0x1b6   : > { %6557 = vst [vmem:[#allocation36_spill] sm:$0xff] %v6026_v5  ;;  %v6028_v2 = vpop.f32.mrf.mxu0  ;;  %v2194_v5 = vadd.f32 %v2035_v31, %v5834_v59  ;;  %v6059_v59 = vld [vmem:[%s6310_s2] ss:$0 sm:$0xff] }
 0x1b7   : > { %6558 = vst [vmem:[#allocation17_spill] sm:$0xff] %v6028_v2  ;;  %v6030_v21 = vpop.f32.mrf.mxu1 }
 0x1b8   : > { %6559 = vst [vmem:[#allocation13_spill] sm:$0xff] %v6030_v21  ;;  %v6032_v45 = vpop.f32.mrf.mxu0 }
 0x1b9   : > { %6560 = vst [vmem:[#allocation26_spill] sm:$0xff] %v6032_v45  ;;  %v6034_v14 = vpop.f32.mrf.mxu1  ;;  %v2460_v45 = vadd.f32 %v5924_v1, %v2195_v29 }
 0x1ba   : > { %6561 = vst [vmem:[#allocation15_spill] sm:$0xff] %v6034_v14  ;;  %v6036_v15 = vpop.f32.mrf.mxu0  ;;  %v2197_v14 = vadd.f32 %v4164_v57, %v5837_v54 }
 0x1bb   : > { %6562 = vst [vmem:[#allocation37_spill] sm:$0xff] %v6036_v15  ;;  %v6038_v13 = vpop.f32.mrf.mxu1 }
 0x1bc   : > { %6563 = vst [vmem:[#allocation7_spill] sm:$0xff] %v6038_v13  ;;  %v6041_v19 = vpop.f32.mrf.mxu0  ;;  %v2459_v13 = vadd.f32 %v5928_v4, %v2194_v5  ;;  %v2462_v29 = vadd.f32 %v5930_v39, %v2197_v14  ;;  %v2199_v5 = vadd.f32 %v5938_v43, %v5843_v56  ;;  %v2461_v4 = vadd.f32 %v5932_v46, %v2196_v10 }
 0x1bd   : > { %6564 = vst [vmem:[#allocation22_spill] sm:$0xff] %v6041_v19  ;;  %v6043_v44 = vpop.f32.mrf.mxu1  ;;  %v2201_v56 = vadd.f32 %v5946_v20, %v5849_v53  ;;  %v2463_v10 = vadd.f32 %v5940_v24, %v2198_v7 }
 0x1be   : > { %v6046_v2 = vpop.f32.mrf.mxu0  ;;  %v2464_v46 = vadd.f32 %v5936_v55, %v2199_v5 }
 0x1bf   : > { %v6048_v21 = vpop.f32.mrf.mxu1 }
 0x1c0   : > { %v4311_v15 = vpop.f32.mrf.mxu0 }
 0x1c1   : > { %v4261_v63 = vpop.f32.mrf.mxu1 }
 0x1c2   : > { %v2729_v41 = vadd.f32 %v4261_v63, %v2460_v45  ;;  %v2837_v19 = vpop.f32.mrf.mxu0  ;;  %v6069_v63 = vld [vmem:[%s6311_s3] ss:$0 sm:$0xff] }
 0x1c3   : > { %v2569_v31 = vpop.f32.mrf.mxu1 }
 0x1c4   : > { %v2997_v54 = vadd.f32 %v4311_v15, %v2729_v41  ;;  %v2728_v1 = vadd.f32 %v2569_v31, %v2459_v13  ;;  %v4314_v57 = vpop.f32.mrf.mxu0 }
 0x1c5   : > { %v4264_v45 = vpop.f32.mrf.mxu1 }
 0x1c6   : > { %v3036_v14 = vmul.f32 %v6059_v59, %v2997_v54  ;;  %v2996_v13 = vadd.f32 %v2837_v19, %v2728_v1  ;;  %v2731_v15 = vadd.f32 %v4264_v45, %v2462_v29  ;;  %v2847_v39 = vpop.f32.mrf.mxu0  ;;  %v2200_v19 = vadd.f32 %v5950_v0, %v5852_v12 }
 0x1c7   : > { %v2579_v30 = vpop.f32.mrf.mxu1 }
 0x1c8   : > { %v3075_v18 = vadd.f32 %v6069_v63, %v3036_v14  ;;  %v3035_v43 = vmul.f32 %v6059_v59, %v2996_v13  ;;  %v2999_v62 = vadd.f32 %v4314_v57, %v2731_v15  ;;  %v2730_v41 = vadd.f32 %v2579_v30, %v2461_v4  ;;  %v4317_v31 = vpop.f32.mrf.mxu0 }
 0x1c9   : > { %v4267_v29 = vpop.f32.mrf.mxu1  ;;  %v2466_v14 = vadd.f32 %v5944_v38, %v2201_v56  ;;  %v2203_v57 = vadd.f32 %v5954_v26, %v5855_v48  ;;  %v2465_v38 = vadd.f32 %v5948_v34, %v2200_v19 }
 0x1ca   : > { %v3107_v54 = vmax.f32 %v3075_v18, 0.0  ;;  %v3074_v1 = vadd.f32 %v6069_v63, %v3035_v43  ;;  %v3038_v53 = vmul.f32 %v6059_v59, %v2999_v62  ;;  %v2998_v20 = vadd.f32 %v2847_v39, %v2730_v41  ;;  %v2857_v45 = vpop.f32.mrf.mxu0 }
 0x1cb   : > { %v2733_v4 = vadd.f32 %v4267_v29, %v2464_v46  ;;  %v2589_v55 = vpop.f32.mrf.mxu1  ;;  %v2468_v18 = vadd.f32 %v5952_v49, %v2203_v57  ;;  %v2202_v43 = vadd.f32 %v5958_v27, %v5858_v32  ;;  %v2205_v62 = vadd.f32 %v5962_v33, %v5861_v40 }
 0x1cc   : > { %3139 = vst [vmem:[%s6088_s22 + $0x8] sm:$0xff] %v3107_v54  ;;  %v3106_v12 = vmax.f32 %v3074_v1, 0.0  ;;  %v3077_v24 = vadd.f32 %v6069_v63, %v3038_v53  ;;  %v3037_v0 = vmul.f32 %v6059_v59, %v2998_v20  ;;  %v2732_v5 = vadd.f32 %v2589_v55, %v2463_v10  ;;  %v4320_v7 = vpop.f32.mrf.mxu0 }
 0x1cd   : > { %v3001_v13 = vadd.f32 %v4317_v31, %v2733_v4  ;;  %v4270_v15 = vpop.f32.mrf.mxu1  ;;  %v2204_v54 = vadd.f32 %v5966_v42, %v5864_v17  ;;  %v2467_v20 = vadd.f32 %v5956_v47, %v2202_v43  ;;  %v2207_v17 = vadd.f32 %v5970_v50, %v5867_v23 }
 0x1ce   : > { %3138 = vst [vmem:[%s6088_s22] sm:$0xff] %v3106_v12  ;;  %v3109_v48 = vmax.f32 %v3077_v24, 0.0  ;;  %v3076_v26 = vadd.f32 %v6069_v63, %v3037_v0  ;;  %v3000_v39 = vadd.f32 %v2857_v45, %v2732_v5  ;;  %v2735_v56 = vadd.f32 %v4270_v15, %v2466_v14  ;;  %v2867_v30 = vpop.f32.mrf.mxu0 }
 0x1cf   : > { %v3040_v34 = vmul.f32 %v6059_v59, %v3001_v13  ;;  %v2599_v41 = vpop.f32.mrf.mxu1  ;;  %v2470_v45 = vadd.f32 %v5960_v9, %v2205_v62  ;;  %v2469_v0 = vadd.f32 %v5964_v28, %v2204_v54  ;;  %v2206_v47 = vadd.f32 %v5974_v22, %v5870_v52 }
 0x1d0   : > { %3141 = vst [vmem:[%s6088_s22 + $0x18] sm:$0xff] %v3109_v48  ;;  %v3108_v31 = vmax.f32 %v3076_v26, 0.0  ;;  %v3039_v46 = vmul.f32 %v6059_v59, %v3000_v39  ;;  %v3003_v10 = vadd.f32 %v4320_v7, %v2735_v56  ;;  %v2734_v19 = vadd.f32 %v2599_v41, %v2465_v38  ;;  %v4323_v29 = vpop.f32.mrf.mxu0 }
 0x1d1   : > { %v3079_v49 = vadd.f32 %v6069_v63, %v3040_v34  ;;  %v4273_v1 = vpop.f32.mrf.mxu1  ;;  %v2472_v15 = vadd.f32 %v5968_v36, %v2207_v17  ;;  %v2208_v43 = vadd.f32 %v5982_v61, %v5876_v16  ;;  %v6565_v17 = vld [vmem:[#allocation41_spill] sm:$0xff] }
 0x1d2   : > { %3140 = vst [vmem:[%s6088_s22 + $0x10] sm:$0xff] %v3108_v31  ;;  %v3078_v32 = vadd.f32 %v6069_v63, %v3039_v46  ;;  %v3042_v40 = vmul.f32 %v6059_v59, %v3003_v10  ;;  %v3002_v27 = vadd.f32 %v2867_v30, %v2734_v19  ;;  %v2737_v33 = vadd.f32 %v4273_v1, %v2468_v18  ;;  %v2877_v53 = vpop.f32.mrf.mxu0 }
 0x1d3   : > { %v3111_v42 = vmax.f32 %v3079_v49, 0.0  ;;  %v2609_v14 = vpop.f32.mrf.mxu1  ;;  %v2471_v30 = vadd.f32 %v5972_v3, %v2206_v47  ;;  %v2209_v18 = vadd.f32 %v5978_v8, %v5873_v6  ;;  %v2211_v19 = vadd.f32 %v5986_v51, %v5879_v25 }
 0x1d4   : > { %v3110_v57 = vmax.f32 %v3078_v32, 0.0  ;;  %v3081_v4 = vadd.f32 %v6069_v63, %v3042_v40  ;;  %v3041_v55 = vmul.f32 %v6059_v59, %v3002_v27  ;;  %v3005_v12 = vadd.f32 %v4323_v29, %v2737_v33  ;;  %v4326_v24 = vpop.f32.mrf.mxu0 }
 0x1d5   : > { %3143 = vst [vmem:[%s6088_s22 + $0x28] sm:$0xff] %v3111_v42  ;;  %v2736_v9 = vadd.f32 %v2609_v14, %v2467_v20  ;;  %v4276_v5 = vpop.f32.mrf.mxu1  ;;  %v2474_v49 = vadd.f32 %v5976_v37, %v2209_v18  ;;  %v2473_v1 = vadd.f32 %v5980_v58, %v2208_v43  ;;  %v2210_v25 = vadd.f32 %v5990_v35, %v5882_v11  ;;  %v6566_v42 = vld [vmem:[#allocation8_spill] sm:$0xff] }
 0x1d6   : > { %3142 = vst [vmem:[%s6088_s22 + $0x20] sm:$0xff] %v3110_v57  ;;  %v3113_v23 = vmax.f32 %v3081_v4, 0.0  ;;  %v3080_v50 = vadd.f32 %v6069_v63, %v3041_v55  ;;  %v3044_v7 = vmul.f32 %v6059_v59, %v3005_v12  ;;  %v2739_v38 = vadd.f32 %v4276_v5, %v2470_v45  ;;  %v2887_v13 = vpop.f32.mrf.mxu0  ;;  %v6567_v12 = vld [vmem:[#allocation5_spill] sm:$0xff] }
 0x1d7   : > { %v3004_v48 = vadd.f32 %v2877_v53, %v2736_v9  ;;  %v2619_v26 = vpop.f32.mrf.mxu1  ;;  %v2476_v45 = vadd.f32 %v5984_v60, %v2211_v19  ;;  %v2213_v37 = vadd.f32 %v6566_v42, %v6565_v17  ;;  %v6580_v42 = vld [vmem:[#allocation46_spill] sm:$0xff] }
 0x1d8   : > { %3145 = vst [vmem:[%s6088_s22 + $0x38] sm:$0xff] %v3113_v23  ;;  %v3112_v28 = vmax.f32 %v3080_v50, 0.0  ;;  %v3083_v52 = vadd.f32 %v6069_v63, %v3044_v7  ;;  %v3007_v22 = vadd.f32 %v4326_v24, %v2739_v38  ;;  %v2738_v39 = vadd.f32 %v2619_v26, %v2469_v0  ;;  %v4329_v56 = vpop.f32.mrf.mxu0  ;;  %v6568_v7 = vld [vmem:[#allocation6_spill] sm:$0xff]  ;;  %v6571_v26 = vld [vmem:[#allocation43_spill] sm:$0xff] }
 0x1d9   : > { %v3043_v36 = vmul.f32 %v6059_v59, %v3004_v48  ;;  %v4279_v62 = vpop.f32.mrf.mxu1  ;;  %v2475_v24 = vadd.f32 %v6567_v12, %v2210_v25  ;;  %v2478_v38 = vadd.f32 %v6568_v7, %v2213_v37  ;;  %v6581_v37 = vld [vmem:[#allocation30_spill] sm:$0xff] }
 0x1da   : > { %3144 = vst [vmem:[%s6088_s22 + $0x30] sm:$0xff] %v3112_v28  ;;  %v3115_v34 = vmax.f32 %v3083_v52, 0.0  ;;  %v3046_v41 = vmul.f32 %v6059_v59, %v3007_v22  ;;  %v3006_v31 = vadd.f32 %v2887_v13, %v2738_v39  ;;  %v2741_v46 = vadd.f32 %v4279_v62, %v2472_v15  ;;  %v2897_v10 = vpop.f32.mrf.mxu0  ;;  %v6569_v13 = vld [vmem:[#allocation42_spill] sm:$0xff]  ;;  %v6570_v15 = vld [vmem:[#allocation12_spill] sm:$0xff] }
 0x1db   : > { %v3082_v3 = vadd.f32 %v6069_v63, %v3043_v36  ;;  %v2629_v29 = vpop.f32.mrf.mxu1  ;;  %v2212_v48 = vadd.f32 %v6570_v15, %v6569_v13  ;;  %v6572_v28 = vld [vmem:[#allocation16_spill] sm:$0xff]  ;;  %v6584_v15 = vld [vmem:[#allocation47_spill] sm:$0xff] }
 0x1dc   : > { %3147 = vst [vmem:[%s6088_s22 + $0x48] sm:$0xff] %v3115_v34  ;;  %v3085_v6 = vadd.f32 %v6069_v63, %v3046_v41  ;;  %v3045_v16 = vmul.f32 %v6059_v59, %v3006_v31  ;;  %v3009_v8 = vadd.f32 %v4329_v56, %v2741_v46  ;;  %v2740_v61 = vadd.f32 %v2629_v29, %v2471_v30  ;;  %v4332_v54 = vpop.f32.mrf.mxu0  ;;  %v6573_v62 = vld [vmem:[#allocation44_spill] sm:$0xff] }
 0x1dd   : > { %v3114_v51 = vmax.f32 %v3082_v3, 0.0  ;;  %v4282_v32 = vpop.f32.mrf.mxu1  ;;  %v2215_v52 = vadd.f32 %v6572_v28, %v6571_v26  ;;  %v6574_v34 = vld [vmem:[#allocation20_spill] sm:$0xff]  ;;  %v6586_v28 = vld [vmem:[#allocation19_spill] sm:$0xff] }
 0x1de   : > { %v3117_v40 = vmax.f32 %v3085_v6, 0.0  ;;  %v3084_v27 = vadd.f32 %v6069_v63, %v3045_v16  ;;  %v3048_v33 = vmul.f32 %v6059_v59, %v3009_v8  ;;  %v3008_v53 = vadd.f32 %v2897_v10, %v2740_v61  ;;  %v2907_v20 = vpop.f32.mrf.mxu0  ;;  %v6575_v16 = vld [vmem:[#allocation10_spill] sm:$0xff] }
 0x1df   : > { %3146 = vst [vmem:[%s6088_s22 + $0x40] sm:$0xff] %v3114_v51  ;;  %v2743_v58 = vadd.f32 %v4282_v32, %v2474_v49  ;;  %v2639_v14 = vpop.f32.mrf.mxu1  ;;  %v2214_v41 = vadd.f32 %v6574_v34, %v6573_v62  ;;  %v2477_v8 = vadd.f32 %v6575_v16, %v2212_v48  ;;  %v6576_v61 = vld [vmem:[#allocation14_spill] sm:$0xff]  ;;  %v6577_v49 = vld [vmem:[#allocation45_spill] sm:$0xff]  ;;  %v6588_v34 = vld [vmem:[#allocation24_spill] sm:$0xff] }
 0x1e0   : > { %3149 = vst [vmem:[%s6088_s22 + $0x58] sm:$0xff] %v3117_v40  ;;  %v3116_v11 = vmax.f32 %v3084_v27, 0.0  ;;  %v3087_v35 = vadd.f32 %v6069_v63, %v3048_v33  ;;  %v3047_v57 = vmul.f32 %v6059_v59, %v3008_v53  ;;  %v2742_v4 = vadd.f32 %v2639_v14, %v2473_v1  ;;  %v4335_v55 = vpop.f32.mrf.mxu0  ;;  %v6578_v1 = vld [vmem:[#allocation25_spill] sm:$0xff] }
 0x1e1   : > { %v3011_v0 = vadd.f32 %v4332_v54, %v2743_v58  ;;  %v4285_v47 = vpop.f32.mrf.mxu1  ;;  %v2480_v54 = vadd.f32 %v6576_v61, %v2215_v52  ;;  %v2217_v25 = vadd.f32 %v6578_v1, %v6577_v49  ;;  %v2216_v58 = vadd.f32 %v6581_v37, %v6580_v42  ;;  %v6585_v48 = vld [vmem:[#allocation9_spill] sm:$0xff]  ;;  %v6587_v52 = vld [vmem:[#allocation11_spill] sm:$0xff] }
 0x1e2   : > { %3148 = vst [vmem:[%s6088_s22 + $0x50] sm:$0xff] %v3116_v11  ;;  %v3119_v60 = vmax.f32 %v3087_v35, 0.0  ;;  %v3086_v9 = vadd.f32 %v6069_v63, %v3047_v57  ;;  %v3010_v5 = vadd.f32 %v2907_v20, %v2742_v4  ;;  %v2745_v23 = vadd.f32 %v4285_v47, %v2476_v45  ;;  %v2917_v50 = vpop.f32.mrf.mxu0  ;;  %v6579_v45 = vld [vmem:[#allocation18_spill] sm:$0xff]  ;;  %v6592_v1 = vld [vmem:[#allocation27_spill] sm:$0xff]  ;;  %v6595_v37 = vld [vmem:[#allocation29_spill] sm:$0xff] }
 0x1e3   : > { %v3050_v22 = vmul.f32 %v6059_v59, %v3011_v0  ;;  %v2649_v39 = vpop.f32.mrf.mxu1  ;;  %v2479_v17 = vadd.f32 %v6579_v45, %v2214_v41  ;;  %v2219_v26 = vadd.f32 %v6585_v48, %v6584_v15  ;;  %v6589_v41 = vld [vmem:[#allocation36_spill] sm:$0xff]  ;;  %v6599_v48 = vld [vmem:[#allocation31_spill] sm:$0xff] }
 0x1e4   : > { %3151 = vst [vmem:[%s6088_s22 + $0x68] sm:$0xff] %v3119_v60  ;;  %v3118_v56 = vmax.f32 %v3086_v9, 0.0  ;;  %v3049_v30 = vmul.f32 %v6059_v59, %v3010_v5  ;;  %v3013_v18 = vadd.f32 %v4335_v55, %v2745_v23  ;;  %v2744_v43 = vadd.f32 %v2649_v39, %v2475_v24  ;;  %v4338_v36 = vpop.f32.mrf.mxu0  ;;  %v6582_v24 = vld [vmem:[#allocation23_spill] sm:$0xff] }
 0x1e5   : > { %v3089_v31 = vadd.f32 %v6069_v63, %v3050_v22  ;;  %v4288_v46 = vpop.f32.mrf.mxu1  ;;  %v2482_v0 = vadd.f32 %v6582_v24, %v2217_v25  ;;  %v2218_v22 = vadd.f32 %v6587_v52, %v6586_v28  ;;  %v6593_v25 = vld [vmem:[#allocation13_spill] sm:$0xff] }
 0x1e6   : > { %3150 = vst [vmem:[%s6088_s22 + $0x60] sm:$0xff] %v3118_v56  ;;  %v3088_v10 = vadd.f32 %v6069_v63, %v3049_v30  ;;  %v3052_v19 = vmul.f32 %v6059_v59, %v3013_v18  ;;  %v3012_v3 = vadd.f32 %v2917_v50, %v2744_v43  ;;  %v2747_v29 = vadd.f32 %v4288_v46, %v2478_v38  ;;  %v2927_v6 = vpop.f32.mrf.mxu0  ;;  %v6583_v38 = vld [vmem:[#allocation28_spill] sm:$0xff]  ;;  %v6601_v52 = vld [vmem:[#allocation33_spill] sm:$0xff] }
 0x1e7   : > { %v3121_v51 = vmax.f32 %v3089_v31, 0.0  ;;  %v2659_v32 = vpop.f32.mrf.mxu1  ;;  %v2481_v13 = vadd.f32 %v6583_v38, %v2216_v58  ;;  %v2221_v31 = vadd.f32 %v6589_v41, %v6588_v34  ;;  %v6596_v58 = vld [vmem:[#allocation15_spill] sm:$0xff] }
 0x1e8   : > { %v3120_v40 = vmax.f32 %v3088_v10, 0.0  ;;  %v3091_v27 = vadd.f32 %v6069_v63, %v3052_v19  ;;  %v3051_v33 = vmul.f32 %v6059_v59, %v3012_v3  ;;  %v3015_v53 = vadd.f32 %v4338_v36, %v2747_v29  ;;  %v4341_v20 = vpop.f32.mrf.mxu0  ;;  %v6602_v34 = vld [vmem:[#allocation35_spill] sm:$0xff] }
 0x1e9   : > { %3153 = vst [vmem:[%s6088_s22 + $0x78] sm:$0xff] %v3121_v51  ;;  %v2746_v14 = vadd.f32 %v2659_v32, %v2477_v8  ;;  %v4291_v11 = vpop.f32.mrf.mxu1  ;;  %v6590_v8 = vld [vmem:[#allocation32_spill] sm:$0xff]  ;;  %v2220_v51 = vadd.f32 %v6593_v25, %v6592_v1  ;;  %v2224_v41 = vadd.f32 %v6048_v21, %v6602_v34 }
 0x1ea   : > { %3152 = vst [vmem:[%s6088_s22 + $0x70] sm:$0xff] %v3120_v40  ;;  %v3123_v35 = vmax.f32 %v3091_v27, 0.0  ;;  %v3090_v57 = vadd.f32 %v6069_v63, %v3051_v33  ;;  %v3054_v4 = vmul.f32 %v6059_v59, %v3015_v53  ;;  %v2749_v55 = vadd.f32 %v4291_v11, %v2480_v54  ;;  %v2937_v12 = vpop.f32.mrf.mxu0  ;;  %v6591_v54 = vld [vmem:[#allocation34_spill] sm:$0xff] }
 0x1eb   : > { %v3014_v47 = vadd.f32 %v2927_v6, %v2746_v14  ;;  %v2669_v60 = vpop.f32.mrf.mxu1  ;;  %v2484_v61 = vadd.f32 %v6590_v8, %v2219_v26  ;;  %v2483_v49 = vadd.f32 %v6591_v54, %v2218_v22  ;;  %v2223_v14 = vadd.f32 %v6596_v58, %v6595_v37  ;;  %v6600_v26 = vld [vmem:[#allocation7_spill] sm:$0xff]  ;;  %v6604_v8 = vld [vmem:[#allocation22_spill] sm:$0xff] }
 0x1ec   : > { %3155 = vst [vmem:[%s6088_s22 + $0x88] sm:$0xff] %v3123_v35  ;;  %v3122_v9 = vmax.f32 %v3090_v57, 0.0  ;;  %v3093_v5 = vadd.f32 %v6069_v63, %v3054_v4  ;;  %v3017_v23 = vadd.f32 %v4341_v20, %v2749_v55  ;;  %v2748_v50 = vadd.f32 %v2669_v60, %v2479_v17  ;;  %v4344_v7 = vpop.f32.mrf.mxu0  ;;  %v6594_v17 = vld [vmem:[#allocation21_spill] sm:$0xff] }
 0x1ed   : > { %v3053_v39 = vmul.f32 %v6059_v59, %v3014_v47  ;;  %v4294_v56 = vpop.f32.mrf.mxu1  ;;  %v2486_v42 = vadd.f32 %v6594_v17, %v2221_v31  ;;  %v2222_v28 = vadd.f32 %v6600_v26, %v6599_v48  ;;  %v2225_v22 = vadd.f32 %v6043_v44, %v6601_v52 }
 0x1ee   : > { %3154 = vst [vmem:[%s6088_s22 + $0x80] sm:$0xff] %v3122_v9  ;;  %v3125_v30 = vmax.f32 %v3093_v5, 0.0  ;;  %v3056_v18 = vmul.f32 %v6059_v59, %v3017_v23  ;;  %v3016_v43 = vadd.f32 %v2937_v12, %v2748_v50  ;;  %v2751_v36 = vadd.f32 %v4294_v56, %v2482_v0  ;;  %v2947_v62 = vpop.f32.mrf.mxu0  ;;  %v6597_v0 = vld [vmem:[#allocation17_spill] sm:$0xff] }
 0x1ef   : > { %v3092_v46 = vadd.f32 %v6069_v63, %v3053_v39  ;;  %v2679_v10 = vpop.f32.mrf.mxu1  ;;  %v2485_v47 = vadd.f32 %v6597_v0, %v2220_v51 }
 0x1f0   : > { %3157 = vst [vmem:[%s6088_s22 + $0x98] sm:$0xff] %v3125_v30  ;;  %v3095_v19 = vadd.f32 %v6069_v63, %v3056_v18  ;;  %v3055_v3 = vmul.f32 %v6059_v59, %v3016_v43  ;;  %v3019_v29 = vadd.f32 %v4344_v7, %v2751_v36  ;;  %v2750_v6 = vadd.f32 %v2679_v10, %v2481_v13  ;;  %v4347_v16 = vpop.f32.mrf.mxu0  ;;  %v6598_v13 = vld [vmem:[#allocation26_spill] sm:$0xff] }
 0x1f1   : > { %v3124_v32 = vmax.f32 %v3092_v46, 0.0  ;;  %v4297_v40 = vpop.f32.mrf.mxu1  ;;  %v2488_v15 = vadd.f32 %v6598_v13, %v2223_v14 }
 0x1f2   : > { %v3127_v27 = vmax.f32 %v3095_v19, 0.0  ;;  %v3094_v33 = vadd.f32 %v6069_v63, %v3055_v3  ;;  %v3058_v53 = vmul.f32 %v6059_v59, %v3019_v29  ;;  %v3018_v20 = vadd.f32 %v2947_v62, %v2750_v6  ;;  %v2957_v45 = vpop.f32.mrf.mxu0  ;;  %v6603_v6 = vld [vmem:[#allocation37_spill] sm:$0xff] }
 0x1f3   : > { %3156 = vst [vmem:[%s6088_s22 + $0x90] sm:$0xff] %v3124_v32  ;;  %v2753_v11 = vadd.f32 %v4297_v40, %v2484_v61  ;;  %v2689_v35 = vpop.f32.mrf.mxu1  ;;  %v2490_v61 = vadd.f32 %v6604_v8, %v2225_v22  ;;  %v2489_v32 = vadd.f32 %v6046_v2, %v2224_v41 }
 0x1f4   : > { %3159 = vst [vmem:[%s6088_s22 + $0xa8] sm:$0xff] %v3127_v27  ;;  %v3126_v57 = vmax.f32 %v3094_v33, 0.0  ;;  %v3097_v4 = vadd.f32 %v6069_v63, %v3058_v53  ;;  %v3057_v55 = vmul.f32 %v6059_v59, %v3018_v20  ;;  %v2752_v12 = vadd.f32 %v2689_v35, %v2483_v49  ;;  %v4350_v24 = vpop.f32.mrf.mxu0 }
 0x1f5   : > { %v3021_v60 = vadd.f32 %v4347_v16, %v2753_v11  ;;  %v4300_v9 = vpop.f32.mrf.mxu1  ;;  %v2487_v16 = vadd.f32 %v6603_v6, %v2222_v28 }
 0x1f6   : > { %3158 = vst [vmem:[%s6088_s22 + $0xa0] sm:$0xff] %v3126_v57  ;;  %v3129_v5 = vmax.f32 %v3097_v4, 0.0  ;;  %v3096_v23 = vadd.f32 %v6069_v63, %v3057_v55  ;;  %v3020_v50 = vadd.f32 %v2957_v45, %v2752_v12  ;;  %v2755_v7 = vadd.f32 %v4300_v9, %v2486_v42  ;;  %v2967_v38 = vpop.f32.mrf.mxu0 }
 0x1f7   : > { %v3060_v39 = vmul.f32 %v6059_v59, %v3021_v60  ;;  %v2699_v56 = vpop.f32.mrf.mxu1 }
 0x1f8   : > { %3161 = vst [vmem:[%s6088_s22 + $0xb8] sm:$0xff] %v3129_v5  ;;  %v3128_v30 = vmax.f32 %v3096_v23, 0.0  ;;  %v3059_v18 = vmul.f32 %v6059_v59, %v3020_v50  ;;  %v3023_v43 = vadd.f32 %v4350_v24, %v2755_v7  ;;  %v2754_v36 = vadd.f32 %v2699_v56, %v2485_v47  ;;  %v4353_v62 = vpop.f32.mrf.mxu0 }
 0x1f9   : > { %v3099_v31 = vadd.f32 %v6069_v63, %v3060_v39  ;;  %v4303_v46 = vpop.f32.mrf.mxu1 }
 0x1fa   : > { %3160 = vst [vmem:[%s6088_s22 + $0xb0] sm:$0xff] %v3128_v30  ;;  %v3098_v44 = vadd.f32 %v6069_v63, %v3059_v18  ;;  %v3062_v10 = vmul.f32 %v6059_v59, %v3023_v43  ;;  %v3022_v19 = vadd.f32 %v2967_v38, %v2754_v36  ;;  %v2757_v3 = vadd.f32 %v4303_v46, %v2488_v15  ;;  %v2977_v29 = vpop.f32.mrf.mxu0 }
 0x1fb   : > { %v3131_v54 = vmax.f32 %v3099_v31, 0.0  ;;  %v2709_v49 = vpop.f32.mrf.mxu1 }
 0x1fc   : > { %v3130_v21 = vmax.f32 %v3098_v44, 0.0  ;;  %v3101_v1 = vadd.f32 %v6069_v63, %v3062_v10  ;;  %v3061_v25 = vmul.f32 %v6059_v59, %v3022_v19  ;;  %v3025_v51 = vadd.f32 %v4353_v62, %v2757_v3  ;;  %v4356_v33 = vpop.f32.mrf.mxu0 }
 0x1fd   : > { %3163 = vst [vmem:[%s6088_s22 + $0xc8] sm:$0xff] %v3131_v54  ;;  %v2756_v40 = vadd.f32 %v2709_v49, %v2487_v16  ;;  %v4306_v27 = vpop.f32.mrf.mxu1 }
 0x1fe   : > { %3162 = vst [vmem:[%s6088_s22 + $0xc0] sm:$0xff] %v3130_v21  ;;  %v3133_v53 = vmax.f32 %v3101_v1, 0.0  ;;  %v3100_v20 = vadd.f32 %v6069_v63, %v3061_v25  ;;  %v3064_v45 = vmul.f32 %v6059_v59, %v3025_v51  ;;  %v2759_v17 = vadd.f32 %v4306_v27, %v2490_v61  ;;  %v2987_v57 = vpop.f32.mrf.mxu0 }
 0x1ff   : > { %v3024_v42 = vadd.f32 %v2977_v29, %v2756_v40  ;;  %v2719_v37 = vpop.f32.mrf.mxu1 }
 0x200   : > { %3165 = vst [vmem:[%s6088_s22 + $0xd8] sm:$0xff] %v3133_v53  ;;  %v3132_v58 = vmax.f32 %v3100_v20, 0.0  ;;  %v3103_v2 = vadd.f32 %v6069_v63, %v3064_v45  ;;  %v3027_v14 = vadd.f32 %v4356_v33, %v2759_v17  ;;  %v2758_v11 = vadd.f32 %v2719_v37, %v2489_v32 }
 0x201   : > { %v3063_v35 = vmul.f32 %v6059_v59, %v3024_v42 }
 0x202   : > { %3164 = vst [vmem:[%s6088_s22 + $0xd0] sm:$0xff] %v3132_v58  ;;  %v3135_v4 = vmax.f32 %v3103_v2, 0.0  ;;  %v3066_v55 = vmul.f32 %v6059_v59, %v3027_v14  ;;  %v3026_v12 = vadd.f32 %v2987_v57, %v2758_v11 }
 0x203   : > { %v3102_v24 = vadd.f32 %v6069_v63, %v3063_v35 }
 0x204   : > { %3167 = vst [vmem:[%s6088_s22 + $0xe8] sm:$0xff] %v3135_v4  ;;  %v3105_v0 = vadd.f32 %v6069_v63, %v3066_v55  ;;  %v3065_v47 = vmul.f32 %v6059_v59, %v3026_v12 }
 0x205   : > { %v3134_v60 = vmax.f32 %v3102_v24, 0.0 }
 0x206   : > { %v3137_v9 = vmax.f32 %v3105_v0, 0.0  ;;  %v3104_v5 = vadd.f32 %v6069_v63, %v3065_v47 }
 0x207   : > { %3166 = vst [vmem:[%s6088_s22 + $0xe0] sm:$0xff] %v3134_v60 }
 0x208   : > { %3169 = vst [vmem:[%s6088_s22 + $0xf8] sm:$0xff] %v3137_v9  ;;  %v3136_v23 = vmax.f32 %v3104_v5, 0.0 }
 0x20a   : > { %3168 = vst [vmem:[%s6088_s22 + $0xf0] sm:$0xff] %v3136_v23 }
 0x20b   : > { %4430 = shalt.err (!%p4427_p5)
}
 0x20c   : > { %s4431_s10 = scalar_lea.hbm %s6255_s5, 4096  ;;  %s4435_s13 = scalar_lea.hbm %s6312_s4, 8192 }
 0x20d   : > { %p4432_p6 = scmp.ne.s32.totalorder %s6255_s5, %s4431_s10  ;;  %p4436_p10 = scmp.lt.s32.totalorder %s6255_s5, %s6312_s4 }
 0x20e   : > { %p4437_p11 = scmp.lt.s32.totalorder %s4435_s13, %s4431_s10 }
 0x20f   : > { %p4433_p7 = pnand %p4432_p6, %p4563_p4 }
 0x210   : > { %p4438_p12 = por %p4437_p11, %p4436_p10 }
 0x211   : > { %p4434_p9 = pneg %p4433_p7 }
 0x213   : > { %p4439_p13 = pnand %p4438_p12, %p4434_p9 }
 0x215   : > { %4442 = shalt.err (!%p4439_p13)
}
 0x216   : > { %s4496_s22 = smov 128   ;;  %s4497_s24 = smov 8  }
 0x217   : > { %4360 = dma.vmem_to_hbm [thread:$0]  (%p4563_p4), %s6257_s26, 4096, %s6255_s5, %s6263_s18, %s4496_s22, %s4496_s22, %s4497_s24  }
 0x218 PF: > { %p4366_p0 = scmp.ge.s32.totalorder %s4493_s20, 2  ;;  %s3200_s29 = sand.u32 1, %s4473_s15  }
 0x219   : > { %s3201_s30 = scalar_lea.sflag [#allocation3], %s3200_s29 }
 0x21a   : > { %p4363_p1 = pnand %p4366_p0, %p4570_p8 }
 0x21c   : > { %p4364_p2 = pneg %p4363_p1 }
 0x21e   : > { %4468 = dma.done.wait (%p4364_p2), %s3201_s30, 4096  }
 0x21f   : > { %4470 = vsyncadd (%p4364_p2), %s3201_s30, 4294963200  ;;  %s17_s20 = sadd.s32 1, %s4493_s20   ;;  %s6605_s15 = smov %s4477_s16 }
 0x220   : > { %p14_p3 = scmp.ge.s32.totalorder %s17_s20, 4   ;;  %s6606_s16 = smov %s4481_s17 }
 0x221   : > { %s6607_s17 = smov %s4576_s28  ;;  %s6608_s18 = smov %s4489_s19 }
 0x222   : > { %s6609_s19 = smov %s6611_s23  ;;  %16 = sbr.rel (!%p14_p3) target bundleno = 4 (0x4), region = 88 }
 0x227   :  { %3206 = vsyncpa [#allocation3], 1 }
 0x228   :  { %3208 = vsyncpa [#allocation3 + $0x1], 1 }

</bundles_post_ra>
